<compile_context>
chip_gen: v5e
topology: v5e:2x2
jax: 0.10.0
libtpu: 0.0.40
codegen_flags: <defaults>
</compile_context>

<pallas_src>
import functools
import numpy as np
import jax
import jax.numpy as jnp
from jax.experimental import pallas as pl
from jax.experimental.pallas import tpu as pltpu


# ----------------------------------------------------------------------------
# sin/cos positional embedding (numpy, identical to the PyTorch reference)
# ----------------------------------------------------------------------------
def get_1d_sincos_pos_embed_from_grid(embed_dim, pos):
    if embed_dim % 2 != 0:
        raise ValueError("embed_dim must be even")
    omega = np.arange(embed_dim // 2, dtype=float)
    omega /= embed_dim / 2.0
    omega = 1.0 / 10000 ** omega
    pos = pos.reshape(-1)
    out = np.einsum("m,d->md", pos, omega)
    return np.concatenate([np.sin(out), np.cos(out)], axis=1)


def get_2d_sincos_pos_embed(embed_dim, grid_size):
    grid_h = np.arange(grid_size, dtype=np.float32)
    grid_w = np.arange(grid_size, dtype=np.float32)
    grid = np.meshgrid(grid_w, grid_h)
    grid = np.stack(grid, axis=0).reshape([2, 1, grid_size, grid_size])
    emb_h = get_1d_sincos_pos_embed_from_grid(embed_dim // 2, grid[0])
    emb_w = get_1d_sincos_pos_embed_from_grid(embed_dim // 2, grid[1])
    return np.concatenate([emb_h, emb_w], axis=1)


# Row layout of the packed per-layer small-vector tensor (depth, N_VEC, K).
_ROW_EMB_B, _ROW_LN1_W, _ROW_LN1_B, _ROW_QKV_B, _ROW_PROJ_B = 0, 1, 2, 3, 4
_ROW_LN2_W, _ROW_LN2_B, _ROW_FC1_B, _ROW_FC2_B = 5, 6, 7, 8
N_VEC = 9


def _layernorm(x, w, b, eps=1e-5):
    # LayerNorm statistics kept in f32 on every chip generation (v5e has no
    # bf16 VPU/EUP -> the f32 elementwise path is already the fast one).
    mu = jnp.mean(x, axis=-1, keepdims=True)
    xc = x - mu
    var = jnp.mean(xc * xc, axis=-1, keepdims=True)
    return xc * jax.lax.rsqrt(var + eps) * w + b


# ----------------------------------------------------------------------------
# Fused kernel.  grid = (batch, depth); depth step i == decoder layer i:
#   step 0:     x = cat([zeros(N_f, D), mask_token + pos_embed], dim=0)
#   every step: x[:N_f] += Linear_i(encoder_feats[select[i], b]); x = Block_i(x)
#   last step:  out[b] = LayerNorm(x)[-P:]
# ----------------------------------------------------------------------------
def fused_decoder_kernel(sel_ref,                           # scalar prefetch (SMEM)
                         enc_ref, qx_ref,
                         wemb_ref, wqkv_ref, wprojh_ref, wfc1_ref, wfc2_ref,
                         vec_ref, norm_ref,
                         o_ref, x_scr,
                         *, num_heads):
    del sel_ref                       # consumed only by the index_maps
    d = pl.program_id(1)              # decoder layer (sequential axis)
    S, D = x_scr.shape
    P = o_ref.shape[0]
    N_f = S - P
    Hmlp = wfc1_ref.shape[-1]
    H = num_heads
    hd = D // H
    scale = float(hd) ** -0.5

    # ---- packed per-layer vectors: ONE DMA per step instead of ~9 tiny ones ----
    vec = vec_ref[...]                                       # (N_VEC, K) f32
    b_emb = vec[_ROW_EMB_B:_ROW_EMB_B + 1, :D]
    ln1_w = vec[_ROW_LN1_W:_ROW_LN1_W + 1, :D]
    ln1_b = vec[_ROW_LN1_B:_ROW_LN1_B + 1, :D]
    b_qkv = vec[_ROW_QKV_B:_ROW_QKV_B + 1, :3 * D]
    b_proj = vec[_ROW_PROJ_B:_ROW_PROJ_B + 1, :D]
    ln2_w = vec[_ROW_LN2_W:_ROW_LN2_W + 1, :D]
    ln2_b = vec[_ROW_LN2_B:_ROW_LN2_B + 1, :D]
    b_fc1 = vec[_ROW_FC1_B:_ROW_FC1_B + 1, :Hmlp]
    b_fc2 = vec[_ROW_FC2_B:_ROW_FC2_B + 1, :D]

    # ---- layer 0: initialise the resident activation slab for this batch ----
    @pl.when(d == 0)
    def _init():
        x_scr[:N_f, :] = jnp.zeros((N_f, D), jnp.float32)
        x_scr[N_f:, :] = qx_ref[...]

    # ---- per-layer decoder_embed(selected hidden state) + skip add ----
    x_add = jnp.dot(enc_ref[...], wemb_ref[...],
                    preferred_element_type=jnp.float32) + b_emb       # (N_f, D)
    x_scr[:N_f, :] = x_scr[:N_f, :] + x_add

    x = x_scr[...]                                                    # (S, D) f32

    # ---------------- attention branch ----------------
    h = _layernorm(x, ln1_w, ln1_b)
    qkv = jnp.dot(h.astype(jnp.bfloat16), wqkv_ref[...],
                  preferred_element_type=jnp.float32) + b_qkv         # (S, 3D)
    # Single transpose + last-dim-preserving reshape splits all heads at once
    # (no per-(batch, head) Python slicing / stacking / concatenation).
    qkv_t = jnp.transpose(qkv)                                        # (3D, S)
    qkv_h = qkv_t.reshape(3 * H, hd, S)                               # (3H, hd, S)
    q_t = qkv_h[0 * H:1 * H]                                          # (H, hd, S)
    k_t = qkv_h[1 * H:2 * H]
    v_t = qkv_h[2 * H:3 * H]
    q = jnp.swapaxes(q_t, 1, 2).astype(jnp.bfloat16)                  # (H, S, hd)

    s = jnp.einsum("hqd,hdk->hqk", q, k_t.astype(jnp.bfloat16),
                   preferred_element_type=jnp.float32) * scale        # (H, S, S)
    s = s - jnp.max(s, axis=-1, keepdims=True)
    p = jnp.exp(s)
    p = p / jnp.sum(p, axis=-1, keepdims=True)                        # f32 softmax
    o = jnp.einsum("hqk,hdk->hqd", p.astype(jnp.bfloat16),
                   v_t.astype(jnp.bfloat16),
                   preferred_element_type=jnp.float32)                # (H, S, hd)
    # Head merge folded into the output projection: per-head matmul + sum over
    # heads (avoids a lane-concat / minor-dim-merging relayout entirely).
    proj = jnp.einsum("hqd,hde->hqe", o.astype(jnp.bfloat16), wprojh_ref[...],
                      preferred_element_type=jnp.float32)             # (H, S, D)
    x = x + jnp.sum(proj, axis=0) + b_proj

    # ---------------- MLP branch ----------------
    h2 = _layernorm(x, ln2_w, ln2_b)
    h2 = jnp.dot(h2.astype(jnp.bfloat16), wfc1_ref[...],
                 preferred_element_type=jnp.float32) + b_fc1
    # TODO(synk): reference uses exact (erf) GELU; tanh approximation kept
    # because erf has no guaranteed Mosaic lowering.
    h2 = jax.nn.gelu(h2, approximate=True)
    h2 = jnp.dot(h2.astype(jnp.bfloat16), wfc2_ref[...],
                 preferred_element_type=jnp.float32) + b_fc2
    x = x + h2
    x_scr[...] = x

    # ---- last layer: final LayerNorm of the query tokens straight to output ----
    @pl.when(d == pl.num_programs(1) - 1)
    def _final():
        o_ref[...] = _layernorm(x[N_f:, :], norm_ref[0:1, :], norm_ref[1:2, :])


# ----------------------------------------------------------------------------
# Wrapper: one pallas_call for the whole forward
# ----------------------------------------------------------------------------
def neck_sa_v3_skip_forward(params, encoded_latent, ids_restore, cfg, *,
                            weight_buffers=None):
    """weight_buffers: optional pipeline depth for the big per-layer weight
    stacks.  Set to 3 on v5e/v6e (128 MiB VMEM) if an xprof trace shows exposed
    weight DMA between layers; keep None on v7x (64 MiB VMEM)."""
    B, N_l, N_f, C = encoded_latent.shape
    depth = cfg["decoder_depth"]
    D = cfg["decoder_embed_dim"]
    P = cfg["num_patches"]
    H = cfg["decoder_num_heads"]
    Hmlp = params["w_fc1"].shape[-1]
    hd = D // H
    S = N_f + P
    # ids_restore is only used for its length in the reference; the fixed
    # pos-embed silently requires it to equal num_patches.
    assert ids_restore.shape[1] == P

    # Encoder states: (B, N_l, N_f, C) -> (N_l, B, N_f, C), bf16, so each grid
    # step fetches ONE contiguous half-size tile (layer select via DMA engine).
    enc = jnp.transpose(encoded_latent, (1, 0, 2, 3)).astype(jnp.bfloat16)

    # mask_token + pos_embed is batch-independent -> a single (P, D) constant.
    query_x = (params["mask_token"][0, 0]
               + params["decoder_pos_embed"][0]).astype(jnp.float32)   # (P, D)

    sel_idx = jnp.asarray(params["select_hidden_states"], dtype=jnp.int32)

    # Pack the 9 small per-layer vectors into a single (depth, N_VEC, K) tensor.
    K = max(3 * D, Hmlp)

    def _row(v):
        return jnp.pad(v.astype(jnp.float32), ((0, 0), (0, K - v.shape[-1])))

    vec_pack = jnp.stack([
        _row(params["embed_b"]), _row(params["ln1_w"]), _row(params["ln1_b"]),
        _row(params["b_qkv"]), _row(params["b_proj"]),
        _row(params["ln2_w"]), _row(params["ln2_b"]),
        _row(params["b_fc1"]), _row(params["b_fc2"]),
    ], axis=1)                                                         # (depth, 9, K)
    norm_wb = jnp.stack([params["norm_w"], params["norm_b"]], axis=0)  # (2, D)

    # Output projection stored per-head: (depth, D, D) -> (depth, H, hd, D).
    w_proj_heads = params["w_proj"].reshape(depth, H, hd, D)

    def wspec(shape):          # per-layer stacked weight, streamed over depth
        n0 = len(shape) - 1
        kwargs = {}
        if weight_buffers is not None:
            kwargs["pipeline_mode"] = pl.Buffered(weight_buffers)
        return pl.BlockSpec((None,) + tuple(shape[1:]),
                            lambda b, d, sel, n0=n0: (d,) + (0,) * n0, **kwargs)

    grid_spec = pltpu.PrefetchScalarGridSpec(
        num_scalar_prefetch=1,
        grid=(B, depth),                       # batch parallel, depth sequential
        in_specs=[
            # encoder hidden state of layer select[d], batch b (contiguous bf16)
            pl.BlockSpec((None, None, N_f, C),
                         lambda b, d, sel: (sel[d], b, 0, 0)),
            pl.BlockSpec((P, D), lambda b, d, sel: (0, 0)),   # mask+pos (const)
            wspec(params["embed_w"].shape),                   # (depth, C, D)
            wspec(params["w_qkv"].shape),                     # (depth, D, 3D)
            wspec(w_proj_heads.shape),                        # (depth, H, hd, D)
            wspec(params["w_fc1"].shape),                     # (depth, D, Hmlp)
            wspec(params["w_fc2"].shape),                     # (depth, Hmlp, D)
            pl.BlockSpec((None, N_VEC, K), lambda b, d, sel: (d, 0, 0)),
            pl.BlockSpec((2, D), lambda b, d, sel: (0, 0)),   # decoder_norm w/b
        ],
        out_specs=pl.BlockSpec((None, P, D), lambda b, d, sel: (b, 0, 0)),
        scratch_shapes=[pltpu.VMEM((S, D), jnp.float32)],     # carried x (per core)
    )

    # Explicit VMEM budget (review: v7x has only 64 MiB physical VMEM).
    w_bytes = 2 * (C * D + D * 3 * D + D * D + 2 * D * Hmlp)          # bf16 stacks
    step_bytes = w_bytes + 2 * N_f * C + 4 * N_VEC * K
    resident_bytes = 4 * (S * D + 2 * P * D + 2 * D)
    vmem_limit = int(min(64 * 2 ** 20,
                         max(16 * 2 ** 20, 4 * (2 * step_bytes + resident_bytes))))

    kern = functools.partial(fused_decoder_kernel, num_heads=H)
    return pl.pallas_call(
        kern,
        out_shape=jax.ShapeDtypeStruct((B, P, D), jnp.float32),
        grid_spec=grid_spec,
        compiler_params=pltpu.CompilerParams(
            dimension_semantics=("parallel", "arbitrary"),
            vmem_limit_bytes=vmem_limit),
    )(sel_idx, enc, query_x,
      params["embed_w"], params["w_qkv"], w_proj_heads,
      params["w_fc1"], params["w_fc2"], vec_pack, norm_wb)


# ----------------------------------------------------------------------------
# Parameter init (deterministic, mirrors the PyTorch module's __init__)
# ----------------------------------------------------------------------------
def xavier_uniform(key, fan_in, fan_out):
    bound = float(np.sqrt(6.0 / (fan_in + fan_out)))
    return jax.random.uniform(key, (fan_in, fan_out), jnp.float32, -bound, bound)


def init_params(key, cfg):
    C = cfg["embed_dim"]
    D = cfg["decoder_embed_dim"]
    depth = cfg["decoder_depth"]
    P = cfg["num_patches"]
    Hmlp = int(cfg["mlp_ratio"] * D)
    total = cfg["total_num_hidden_states"]

    # connect_mode == 'uniform'
    skip = total // (depth - 1)
    sel = [skip * i for i in range(depth)]
    sel[-1] = total - 1
    sel = sel[::-1]

    keys = jax.random.split(key, 5 * depth)
    wdt = jnp.bfloat16   # matmul operands bf16; LN/softmax/GELU stay f32

    embed_w = jnp.stack([xavier_uniform(keys[i], C, D)
                         for i in range(depth)]).astype(wdt)
    w_qkv = jnp.stack([xavier_uniform(keys[depth + 4 * i + 0], D, 3 * D)
                       for i in range(depth)]).astype(wdt)
    w_proj = jnp.stack([xavier_uniform(keys[depth + 4 * i + 1], D, D)
                        for i in range(depth)]).astype(wdt)
    w_fc1 = jnp.stack([xavier_uniform(keys[depth + 4 * i + 2], D, Hmlp)
                       for i in range(depth)]).astype(wdt)
    w_fc2 = jnp.stack([xavier_uniform(keys[depth + 4 * i + 3], Hmlp, D)
                       for i in range(depth)]).astype(wdt)

    pos = get_2d_sincos_pos_embed(D, int(P ** 0.5)).astype(np.float32)[None]  # (1,P,D)

    return dict(
        select_hidden_states=sel,
        embed_w=embed_w, embed_b=jnp.zeros((depth, D), jnp.float32),
        mask_token=jnp.zeros((1, 1, D), jnp.float32),
        decoder_pos_embed=jnp.asarray(pos),
        ln1_w=jnp.ones((depth, D), jnp.float32),
        ln1_b=jnp.zeros((depth, D), jnp.float32),
        w_qkv=w_qkv, b_qkv=jnp.zeros((depth, 3 * D), jnp.float32),
        w_proj=w_proj, b_proj=jnp.zeros((depth, D), jnp.float32),
        ln2_w=jnp.ones((depth, D), jnp.float32),
        ln2_b=jnp.zeros((depth, D), jnp.float32),
        w_fc1=w_fc1, b_fc1=jnp.zeros((depth, Hmlp), jnp.float32),
        w_fc2=w_fc2, b_fc2=jnp.zeros((depth, D), jnp.float32),
        norm_w=jnp.ones((D,), jnp.float32), norm_b=jnp.zeros((D,), jnp.float32),
    )


# ----------------------------------------------------------------------------
if __name__ == "__main__":
    cfg = dict(
        patch_size=2, in_chans=4, num_patches=16, embed_dim=64,
        decoder_embed_dim=32, decoder_depth=4, decoder_num_heads=4,
        mlp_ratio=4, total_num_hidden_states=7,
    )
    key = jax.random.PRNGKey(0)
    pkey, xkey = jax.random.split(key)
    params = init_params(pkey, cfg)

    B, N_f = 2, 8
    encoded_latent = jax.random.normal(
        xkey, (B, cfg["total_num_hidden_states"], N_f, cfg["embed_dim"]),
        jnp.float32)
    # NOTE: ids_restore is only used for its length (the PyTorch reference
    # never gathers with it).
    ids_restore = jnp.tile(
        jnp.arange(cfg["num_patches"], dtype=jnp.int32)[None, :], (B, 1))

    # weight_buffers=3 is the v5e/v6e weight-pipelining knob; default None.
    out = neck_sa_v3_skip_forward(params, encoded_latent, ids_restore, cfg,
                                  weight_buffers=None)
    out = jax.block_until_ready(out)
    assert out.shape == (B, cfg["num_patches"], cfg["decoder_embed_dim"]), out.shape
    assert bool(jnp.all(jnp.isfinite(out)))
    print("KERNEL_OK")
</pallas_src>

<mosaic_0001>
module attributes {stable_mosaic.version = 11 : i64} {
  func.func @fused_decoder_kernel(%arg0: i32, %arg1: i32, %arg2: memref<4xi32, #tpu.memory_space<smem>>, %arg3: memref<1x1x8x64xbf16, #tpu.memory_space<vmem>>, %arg4: memref<16x32xf32, #tpu.memory_space<vmem>>, %arg5: memref<1x64x32xbf16, #tpu.memory_space<vmem>>, %arg6: memref<1x32x96xbf16, #tpu.memory_space<vmem>>, %arg7: memref<1x4x8x32xbf16, #tpu.memory_space<vmem>>, %arg8: memref<1x32x128xbf16, #tpu.memory_space<vmem>>, %arg9: memref<1x128x32xbf16, #tpu.memory_space<vmem>>, %arg10: memref<1x9x128xf32, #tpu.memory_space<vmem>>, %arg11: memref<2x32xf32, #tpu.memory_space<vmem>>, %arg12: memref<1x16x32xf32, #tpu.memory_space<vmem>>, %arg13: memref<24x32xf32, #tpu.memory_space<vmem>>) attributes {dimension_semantics = [#tpu.dimension_semantics<parallel>, #tpu.dimension_semantics<arbitrary>], iteration_bounds = array<i64: 2, 4>, scalar_prefetch = 1 : i64, scratch_operands = 1 : i64, tpu.core_type = #tpu.core_type<tc>, window_params = [{transform_indices = @transform_0, window_bounds = array<i64: 1, 1, 8, 64>}, {pipeline_mode = #tpu.pipeline_mode<synchronous>, transform_indices = @transform_1, window_bounds = array<i64: 16, 32>}, {transform_indices = @transform_2, window_bounds = array<i64: 1, 64, 32>}, {transform_indices = @transform_3, window_bounds = array<i64: 1, 32, 96>}, {transform_indices = @transform_4, window_bounds = array<i64: 1, 4, 8, 32>}, {transform_indices = @transform_5, window_bounds = array<i64: 1, 32, 128>}, {transform_indices = @transform_6, window_bounds = array<i64: 1, 128, 32>}, {transform_indices = @transform_7, window_bounds = array<i64: 1, 9, 128>}, {pipeline_mode = #tpu.pipeline_mode<synchronous>, transform_indices = @transform_8, window_bounds = array<i64: 2, 32>}, {transform_indices = @transform_9, window_bounds = array<i64: 1, 16, 32>}]} {
    %c0 = arith.constant 0 : index
    %c0_0 = arith.constant 0 : index
    %c0_1 = arith.constant 0 : index
    %0 = vector.load %arg10[%c0, %c0_0, %c0_1] : memref<1x9x128xf32, #tpu.memory_space<vmem>>, vector<1x9x128xf32>
    %1 = vector.shape_cast %0 : vector<1x9x128xf32> to vector<9x128xf32>
    %2 = vector.extract_strided_slice %1 {offsets = [0, 0], sizes = [1, 32], strides = [1, 1]} : vector<9x128xf32> to vector<1x32xf32>
    %3 = vector.extract_strided_slice %1 {offsets = [1, 0], sizes = [1, 32], strides = [1, 1]} : vector<9x128xf32> to vector<1x32xf32>
    %4 = vector.extract_strided_slice %1 {offsets = [2, 0], sizes = [1, 32], strides = [1, 1]} : vector<9x128xf32> to vector<1x32xf32>
    %5 = vector.extract_strided_slice %1 {offsets = [3, 0], sizes = [1, 96], strides = [1, 1]} : vector<9x128xf32> to vector<1x96xf32>
    %6 = vector.extract_strided_slice %1 {offsets = [4, 0], sizes = [1, 32], strides = [1, 1]} : vector<9x128xf32> to vector<1x32xf32>
    %7 = vector.extract_strided_slice %1 {offsets = [5, 0], sizes = [1, 32], strides = [1, 1]} : vector<9x128xf32> to vector<1x32xf32>
    %8 = vector.extract_strided_slice %1 {offsets = [6, 0], sizes = [1, 32], strides = [1, 1]} : vector<9x128xf32> to vector<1x32xf32>
    %9 = vector.extract_strided_slice %1 {offsets = [7, 0], sizes = [1, 128], strides = [1, 1]} : vector<9x128xf32> to vector<1x128xf32>
    %10 = vector.extract_strided_slice %1 {offsets = [8, 0], sizes = [1, 32], strides = [1, 1]} : vector<9x128xf32> to vector<1x32xf32>
    %c0_i32 = arith.constant 0 : i32
    %11 = arith.cmpi eq, %arg1, %c0_i32 : i32
    %12 = arith.extui %11 : i1 to i32
    %c0_i32_2 = arith.constant 0 : i32
    %13 = arith.cmpi ne, %12, %c0_i32_2 : i32
    scf.if %13 {
      %cst_56 = arith.constant 0.000000e+00 : f32
      %132 = vector.broadcast %cst_56 : f32 to vector<8x32xf32>
      %c0_57 = arith.constant 0 : index
      %c0_58 = arith.constant 0 : index
      %133 = vector.load %arg13[%c0_57, %c0_58] : memref<24x32xf32, #tpu.memory_space<vmem>>, vector<8x32xf32>
      tpu.vector_store %arg13[%c0_57, %c0_58], %132 {strides = array<i32>} : memref<24x32xf32, #tpu.memory_space<vmem>>, vector<8x32xf32>,
      %c0_59 = arith.constant 0 : index
      %c0_60 = arith.constant 0 : index
      %134 = vector.load %arg4[%c0_59, %c0_60] : memref<16x32xf32, #tpu.memory_space<vmem>>, vector<16x32xf32>
      %c8 = arith.constant 8 : index
      %c0_61 = arith.constant 0 : index
      %135 = vector.load %arg13[%c8, %c0_61] : memref<24x32xf32, #tpu.memory_space<vmem>>, vector<16x32xf32>
      tpu.vector_store %arg13[%c8, %c0_61], %134 {strides = array<i32>} : memref<24x32xf32, #tpu.memory_space<vmem>>, vector<16x32xf32>,
    } else {
    }
    %c0_3 = arith.constant 0 : index
    %c0_4 = arith.constant 0 : index
    %c0_5 = arith.constant 0 : index
    %c0_6 = arith.constant 0 : index
    %14 = vector.load %arg3[%c0_3, %c0_4, %c0_5, %c0_6] : memref<1x1x8x64xbf16, #tpu.memory_space<vmem>>, vector<1x1x8x64xbf16>
    %15 = vector.shape_cast %14 : vector<1x1x8x64xbf16> to vector<8x64xbf16>
    %c0_7 = arith.constant 0 : index
    %c0_8 = arith.constant 0 : index
    %c0_9 = arith.constant 0 : index
    %16 = vector.load %arg5[%c0_7, %c0_8, %c0_9] : memref<1x64x32xbf16, #tpu.memory_space<vmem>>, vector<1x64x32xbf16>
    %17 = vector.shape_cast %16 : vector<1x64x32xbf16> to vector<64x32xbf16>
    %cst = arith.constant dense<0.000000e+00> : vector<8x32xf32>
    %18 = tpu.matmul %15, %17, %cst {dimension_numbers = #tpu.dot_dimension_numbers<[1], [0], [0], [1], [0, 0, 1, 1], [], []>} : vector<8x64xbf16>, vector<64x32xbf16>, vector<8x32xf32> -> vector<8x32xf32>
    %19 = vector.broadcast %2 : vector<1x32xf32> to vector<8x32xf32>
    %20 = arith.addf %18, %19 : vector<8x32xf32>
    %c0_10 = arith.constant 0 : index
    %c0_11 = arith.constant 0 : index
    %21 = vector.load %arg13[%c0_10, %c0_11] : memref<24x32xf32, #tpu.memory_space<vmem>>, vector<8x32xf32>
    %22 = arith.addf %21, %20 : vector<8x32xf32>
    %c0_12 = arith.constant 0 : index
    %c0_13 = arith.constant 0 : index
    %23 = vector.load %arg13[%c0_12, %c0_13] : memref<24x32xf32, #tpu.memory_space<vmem>>, vector<8x32xf32>
    tpu.vector_store %arg13[%c0_12, %c0_13], %22 {strides = array<i32>} : memref<24x32xf32, #tpu.memory_space<vmem>>, vector<8x32xf32>,
    %c0_14 = arith.constant 0 : index
    %c0_15 = arith.constant 0 : index
    %24 = vector.load %arg13[%c0_14, %c0_15] : memref<24x32xf32, #tpu.memory_space<vmem>>, vector<24x32xf32>
    %cst_16 = arith.constant dense<0.000000e+00> : vector<24xf32>
    %25 = vector.multi_reduction <add>, %24, %cst_16 [1] : vector<24x32xf32> to vector<24xf32>
    %26 = vector.shape_cast %25 : vector<24xf32> to vector<24x1xf32>
    %cst_17 = arith.constant 3.200000e+01 : f32
    %27 = vector.broadcast %cst_17 : f32 to vector<24x1xf32>
    %28 = arith.divf %26, %27 : vector<24x1xf32>
    %29 = vector.broadcast %28 : vector<24x1xf32> to vector<24x32xf32>
    %30 = arith.subf %24, %29 : vector<24x32xf32>
    %31 = arith.mulf %30, %30 : vector<24x32xf32>
    %cst_18 = arith.constant dense<0.000000e+00> : vector<24xf32>
    %32 = vector.multi_reduction <add>, %31, %cst_18 [1] : vector<24x32xf32> to vector<24xf32>
    %33 = vector.shape_cast %32 : vector<24xf32> to vector<24x1xf32>
    %cst_19 = arith.constant 3.200000e+01 : f32
    %34 = vector.broadcast %cst_19 : f32 to vector<24x1xf32>
    %35 = arith.divf %33, %34 : vector<24x1xf32>
    %cst_20 = arith.constant 9.99999974E-6 : f32
    %36 = vector.broadcast %cst_20 : f32 to vector<24x1xf32>
    %37 = arith.addf %35, %36 : vector<24x1xf32>
    %38 = math.rsqrt %37 : vector<24x1xf32>
    %39 = vector.broadcast %38 : vector<24x1xf32> to vector<24x32xf32>
    %40 = arith.mulf %30, %39 : vector<24x32xf32>
    %41 = vector.broadcast %3 : vector<1x32xf32> to vector<24x32xf32>
    %42 = arith.mulf %40, %41 : vector<24x32xf32>
    %43 = vector.broadcast %4 : vector<1x32xf32> to vector<24x32xf32>
    %44 = arith.addf %42, %43 : vector<24x32xf32>
    %45 = arith.truncf %44 : vector<24x32xf32> to vector<24x32xbf16>
    %c0_21 = arith.constant 0 : index
    %c0_22 = arith.constant 0 : index
    %c0_23 = arith.constant 0 : index
    %46 = vector.load %arg6[%c0_21, %c0_22, %c0_23] : memref<1x32x96xbf16, #tpu.memory_space<vmem>>, vector<1x32x96xbf16>
    %47 = vector.shape_cast %46 : vector<1x32x96xbf16> to vector<32x96xbf16>
    %cst_24 = arith.constant dense<0.000000e+00> : vector<24x96xf32>
    %48 = tpu.matmul %45, %47, %cst_24 {dimension_numbers = #tpu.dot_dimension_numbers<[1], [0], [0], [1], [0, 0, 1, 1], [], []>} : vector<24x32xbf16>, vector<32x96xbf16>, vector<24x96xf32> -> vector<24x96xf32>
    %49 = vector.broadcast %5 : vector<1x96xf32> to vector<24x96xf32>
    %50 = arith.addf %48, %49 : vector<24x96xf32>
    %51 = tpu.transpose %50, [1, 0] : vector<24x96xf32> -> vector<96x24xf32>
    %52 = vector.shape_cast %51 : vector<96x24xf32> to vector<12x8x24xf32>
    %53 = vector.extract_strided_slice %52 {offsets = [0, 0, 0], sizes = [4, 8, 24], strides = [1, 1, 1]} : vector<12x8x24xf32> to vector<4x8x24xf32>
    %54 = vector.extract_strided_slice %52 {offsets = [4, 0, 0], sizes = [4, 8, 24], strides = [1, 1, 1]} : vector<12x8x24xf32> to vector<4x8x24xf32>
    %55 = vector.extract_strided_slice %52 {offsets = [8, 0, 0], sizes = [4, 8, 24], strides = [1, 1, 1]} : vector<12x8x24xf32> to vector<4x8x24xf32>
    %56 = tpu.transpose %53, [0, 2, 1] : vector<4x8x24xf32> -> vector<4x24x8xf32>
    %57 = arith.truncf %56 : vector<4x24x8xf32> to vector<4x24x8xbf16>
    %58 = arith.truncf %54 : vector<4x8x24xf32> to vector<4x8x24xbf16>
    "tpu.trace_start"() <{level = 10 : i32, message = "hqd,hdk->hqk"}> : () -> ()
    %cst_25 = arith.constant dense<0.000000e+00> : vector<4x24x24xf32>
    %59 = tpu.matmul %57, %58, %cst_25 {dimension_numbers = #tpu.dot_dimension_numbers<[2], [1], [1], [2], [0, 0, 0, 1, 1, 2], [0], [0]>} : vector<4x24x8xbf16>, vector<4x8x24xbf16>, vector<4x24x24xf32> -> vector<4x24x24xf32>
    "tpu.trace_stop"() : () -> ()
    %cst_26 = arith.constant 0.353553385 : f32
    %60 = vector.broadcast %cst_26 : f32 to vector<4x24x24xf32>
    %61 = arith.mulf %59, %60 : vector<4x24x24xf32>
    %cst_27 = arith.constant dense<0xFF800000> : vector<4x24xf32>
    %62 = vector.multi_reduction <maximumf>, %61, %cst_27 [2] : vector<4x24x24xf32> to vector<4x24xf32>
    %63 = vector.shape_cast %62 : vector<4x24xf32> to vector<4x24x1xf32>
    %64 = vector.broadcast %63 : vector<4x24x1xf32> to vector<4x24x24xf32>
    %65 = arith.subf %61, %64 : vector<4x24x24xf32>
    %66 = math.exp %65 : vector<4x24x24xf32>
    %cst_28 = arith.constant dense<0.000000e+00> : vector<4x24xf32>
    %67 = vector.multi_reduction <add>, %66, %cst_28 [2] : vector<4x24x24xf32> to vector<4x24xf32>
    %68 = vector.shape_cast %67 : vector<4x24xf32> to vector<4x24x1xf32>
    %69 = vector.broadcast %68 : vector<4x24x1xf32> to vector<4x24x24xf32>
    %70 = arith.divf %66, %69 : vector<4x24x24xf32>
    %71 = arith.truncf %70 : vector<4x24x24xf32> to vector<4x24x24xbf16>
    %72 = arith.truncf %55 : vector<4x8x24xf32> to vector<4x8x24xbf16>
    "tpu.trace_start"() <{level = 10 : i32, message = "hqk,hdk->hqd"}> : () -> ()
    %cst_29 = arith.constant dense<0.000000e+00> : vector<4x24x8xf32>
    %73 = tpu.matmul %71, %72, %cst_29 {dimension_numbers = #tpu.dot_dimension_numbers<[2], [2], [1], [1], [0, 0, 0, 1, 1, 1], [0], [0]>} : vector<4x24x24xbf16>, vector<4x8x24xbf16>, vector<4x24x8xf32> -> vector<4x24x8xf32>
    "tpu.trace_stop"() : () -> ()
    %74 = arith.truncf %73 : vector<4x24x8xf32> to vector<4x24x8xbf16>
    %c0_30 = arith.constant 0 : index
    %c0_31 = arith.constant 0 : index
    %c0_32 = arith.constant 0 : index
    %c0_33 = arith.constant 0 : index
    %75 = vector.load %arg7[%c0_30, %c0_31, %c0_32, %c0_33] : memref<1x4x8x32xbf16, #tpu.memory_space<vmem>>, vector<1x4x8x32xbf16>
    %76 = vector.shape_cast %75 : vector<1x4x8x32xbf16> to vector<4x8x32xbf16>
    "tpu.trace_start"() <{level = 10 : i32, message = "hqd,hde->hqe"}> : () -> ()
    %cst_34 = arith.constant dense<0.000000e+00> : vector<4x24x32xf32>
    %77 = tpu.matmul %74, %76, %cst_34 {dimension_numbers = #tpu.dot_dimension_numbers<[2], [1], [1], [2], [0, 0, 0, 1, 1, 2], [0], [0]>} : vector<4x24x8xbf16>, vector<4x8x32xbf16>, vector<4x24x32xf32> -> vector<4x24x32xf32>
    "tpu.trace_stop"() : () -> ()
    %cst_35 = arith.constant dense<0.000000e+00> : vector<24x32xf32>
    %78 = vector.multi_reduction <add>, %77, %cst_35 [0] : vector<4x24x32xf32> to vector<24x32xf32>
    %79 = arith.addf %24, %78 : vector<24x32xf32>
    %80 = vector.broadcast %6 : vector<1x32xf32> to vector<24x32xf32>
    %81 = arith.addf %79, %80 : vector<24x32xf32>
    %cst_36 = arith.constant dense<0.000000e+00> : vector<24xf32>
    %82 = vector.multi_reduction <add>, %81, %cst_36 [1] : vector<24x32xf32> to vector<24xf32>
    %83 = vector.shape_cast %82 : vector<24xf32> to vector<24x1xf32>
    %cst_37 = arith.constant 3.200000e+01 : f32
    %84 = vector.broadcast %cst_37 : f32 to vector<24x1xf32>
    %85 = arith.divf %83, %84 : vector<24x1xf32>
    %86 = vector.broadcast %85 : vector<24x1xf32> to vector<24x32xf32>
    %87 = arith.subf %81, %86 : vector<24x32xf32>
    %88 = arith.mulf %87, %87 : vector<24x32xf32>
    %cst_38 = arith.constant dense<0.000000e+00> : vector<24xf32>
    %89 = vector.multi_reduction <add>, %88, %cst_38 [1] : vector<24x32xf32> to vector<24xf32>
    %90 = vector.shape_cast %89 : vector<24xf32> to vector<24x1xf32>
    %cst_39 = arith.constant 3.200000e+01 : f32
    %91 = vector.broadcast %cst_39 : f32 to vector<24x1xf32>
    %92 = arith.divf %90, %91 : vector<24x1xf32>
    %cst_40 = arith.constant 9.99999974E-6 : f32
    %93 = vector.broadcast %cst_40 : f32 to vector<24x1xf32>
    %94 = arith.addf %92, %93 : vector<24x1xf32>
    %95 = math.rsqrt %94 : vector<24x1xf32>
    %96 = vector.broadcast %95 : vector<24x1xf32> to vector<24x32xf32>
    %97 = arith.mulf %87, %96 : vector<24x32xf32>
    %98 = vector.broadcast %7 : vector<1x32xf32> to vector<24x32xf32>
    %99 = arith.mulf %97, %98 : vector<24x32xf32>
    %100 = vector.broadcast %8 : vector<1x32xf32> to vector<24x32xf32>
    %101 = arith.addf %99, %100 : vector<24x32xf32>
    %102 = arith.truncf %101 : vector<24x32xf32> to vector<24x32xbf16>
    %c0_41 = arith.constant 0 : index
    %c0_42 = arith.constant 0 : index
    %c0_43 = arith.constant 0 : index
    %103 = vector.load %arg8[%c0_41, %c0_42, %c0_43] : memref<1x32x128xbf16, #tpu.memory_space<vmem>>, vector<1x32x128xbf16>
    %104 = vector.shape_cast %103 : vector<1x32x128xbf16> to vector<32x128xbf16>
    %cst_44 = arith.constant dense<0.000000e+00> : vector<24x128xf32>
    %105 = tpu.matmul %102, %104, %cst_44 {dimension_numbers = #tpu.dot_dimension_numbers<[1], [0], [0], [1], [0, 0, 1, 1], [], []>} : vector<24x32xbf16>, vector<32x128xbf16>, vector<24x128xf32> -> vector<24x128xf32>
    %106 = vector.broadcast %9 : vector<1x128xf32> to vector<24x128xf32>
    %107 = arith.addf %105, %106 : vector<24x128xf32>
    %108 = arith.mulf %107, %107 : vector<24x128xf32>
    %109 = arith.mulf %107, %108 : vector<24x128xf32>
    %cst_45 = arith.constant 4.471500e-02 : f32
    %110 = vector.broadcast %cst_45 : f32 to vector<24x128xf32>
    %111 = arith.mulf %110, %109 : vector<24x128xf32>
    %112 = arith.addf %107, %111 : vector<24x128xf32>
    %cst_46 = arith.constant 0.797884583 : f32
    %113 = vector.broadcast %cst_46 : f32 to vector<24x128xf32>
    %114 = arith.mulf %113, %112 : vector<24x128xf32>
    %115 = math.tanh %114 : vector<24x128xf32>
    %cst_47 = arith.constant 1.000000e+00 : f32
    %116 = vector.broadcast %cst_47 : f32 to vector<24x128xf32>
    %117 = arith.addf %116, %115 : vector<24x128xf32>
    %cst_48 = arith.constant 5.000000e-01 : f32
    %118 = vector.broadcast %cst_48 : f32 to vector<24x128xf32>
    %119 = arith.mulf %118, %117 : vector<24x128xf32>
    %120 = arith.mulf %107, %119 : vector<24x128xf32>
    %121 = arith.truncf %120 : vector<24x128xf32> to vector<24x128xbf16>
    %c0_49 = arith.constant 0 : index
    %c0_50 = arith.constant 0 : index
    %c0_51 = arith.constant 0 : index
    %122 = vector.load %arg9[%c0_49, %c0_50, %c0_51] : memref<1x128x32xbf16, #tpu.memory_space<vmem>>, vector<1x128x32xbf16>
    %123 = vector.shape_cast %122 : vector<1x128x32xbf16> to vector<128x32xbf16>
    %cst_52 = arith.constant dense<0.000000e+00> : vector<24x32xf32>
    %124 = tpu.matmul %121, %123, %cst_52 {dimension_numbers = #tpu.dot_dimension_numbers<[1], [0], [0], [1], [0, 0, 1, 1], [], []>} : vector<24x128xbf16>, vector<128x32xbf16>, vector<24x32xf32> -> vector<24x32xf32>
    %125 = vector.broadcast %10 : vector<1x32xf32> to vector<24x32xf32>
    %126 = arith.addf %124, %125 : vector<24x32xf32>
    %127 = arith.addf %81, %126 : vector<24x32xf32>
    %c0_53 = arith.constant 0 : index
    %c0_54 = arith.constant 0 : index
    %128 = vector.load %arg13[%c0_53, %c0_54] : memref<24x32xf32, #tpu.memory_space<vmem>>, vector<24x32xf32>
    tpu.vector_store %arg13[%c0_53, %c0_54], %127 {strides = array<i32>} : memref<24x32xf32, #tpu.memory_space<vmem>>, vector<24x32xf32>,
    %c3_i32 = arith.constant 3 : i32
    %129 = arith.cmpi eq, %arg1, %c3_i32 : i32
    %130 = arith.extui %129 : i1 to i32
    %c0_i32_55 = arith.constant 0 : i32
    %131 = arith.cmpi ne, %130, %c0_i32_55 : i32
    scf.if %131 {
      %132 = vector.extract_strided_slice %127 {offsets = [8, 0], sizes = [16, 32], strides = [1, 1]} : vector<24x32xf32> to vector<16x32xf32>
      %c0_56 = arith.constant 0 : index
      %c0_57 = arith.constant 0 : index
      %133 = vector.load %arg11[%c0_56, %c0_57] : memref<2x32xf32, #tpu.memory_space<vmem>>, vector<1x32xf32>
      %c1 = arith.constant 1 : index
      %c0_58 = arith.constant 0 : index
      %134 = vector.load %arg11[%c1, %c0_58] : memref<2x32xf32, #tpu.memory_space<vmem>>, vector<1x32xf32>
      %cst_59 = arith.constant dense<0.000000e+00> : vector<16xf32>
      %135 = vector.multi_reduction <add>, %132, %cst_59 [1] : vector<16x32xf32> to vector<16xf32>
      %136 = vector.shape_cast %135 : vector<16xf32> to vector<16x1xf32>
      %cst_60 = arith.constant 3.200000e+01 : f32
      %137 = vector.broadcast %cst_60 : f32 to vector<16x1xf32>
      %138 = arith.divf %136, %137 : vector<16x1xf32>
      %139 = vector.broadcast %138 : vector<16x1xf32> to vector<16x32xf32>
      %140 = arith.subf %132, %139 : vector<16x32xf32>
      %141 = arith.mulf %140, %140 : vector<16x32xf32>
      %cst_61 = arith.constant dense<0.000000e+00> : vector<16xf32>
      %142 = vector.multi_reduction <add>, %141, %cst_61 [1] : vector<16x32xf32> to vector<16xf32>
      %143 = vector.shape_cast %142 : vector<16xf32> to vector<16x1xf32>
      %cst_62 = arith.constant 3.200000e+01 : f32
      %144 = vector.broadcast %cst_62 : f32 to vector<16x1xf32>
      %145 = arith.divf %143, %144 : vector<16x1xf32>
      %cst_63 = arith.constant 9.99999974E-6 : f32
      %146 = vector.broadcast %cst_63 : f32 to vector<16x1xf32>
      %147 = arith.addf %145, %146 : vector<16x1xf32>
      %148 = math.rsqrt %147 : vector<16x1xf32>
      %149 = vector.broadcast %148 : vector<16x1xf32> to vector<16x32xf32>
      %150 = arith.mulf %140, %149 : vector<16x32xf32>
      %151 = vector.broadcast %133 : vector<1x32xf32> to vector<16x32xf32>
      %152 = arith.mulf %150, %151 : vector<16x32xf32>
      %153 = vector.broadcast %134 : vector<1x32xf32> to vector<16x32xf32>
      %154 = arith.addf %152, %153 : vector<16x32xf32>
      %c0_64 = arith.constant 0 : index
      %c0_65 = arith.constant 0 : index
      %c0_66 = arith.constant 0 : index
      %155 = vector.load %arg12[%c0_64, %c0_65, %c0_66] : memref<1x16x32xf32, #tpu.memory_space<vmem>>, vector<1x16x32xf32>
      %156 = vector.shape_cast %155 : vector<1x16x32xf32> to vector<16x32xf32>
      %157 = vector.shape_cast %154 : vector<16x32xf32> to vector<1x16x32xf32>
      tpu.vector_store %arg12[%c0_64, %c0_65, %c0_66], %157 {strides = array<i32>} : memref<1x16x32xf32, #tpu.memory_space<vmem>>, vector<1x16x32xf32>,
    } else {
    }
    return
  }
  func.func @transform_0(%arg0: i32, %arg1: i32, %arg2: memref<4xi32, #tpu.memory_space<smem>>) -> (i32, i32, i32, i32) {
    %0 = arith.index_cast %arg1 : i32 to index
    %1 = memref.load %arg2[%0] : memref<4xi32, #tpu.memory_space<smem>>
    %c0_i32 = arith.constant 0 : i32
    %c0_i32_0 = arith.constant 0 : i32
    %c0_i32_1 = arith.constant 0 : i32
    return %1, %arg0, %c0_i32, %c0_i32_0 : i32, i32, i32, i32
  }
  func.func @transform_1(%arg0: i32, %arg1: i32, %arg2: memref<4xi32, #tpu.memory_space<smem>>) -> (i32, i32) {
    %c0_i32 = arith.constant 0 : i32
    %c0_i32_0 = arith.constant 0 : i32
    %c0_i32_1 = arith.constant 0 : i32
    return %c0_i32, %c0_i32_0 : i32, i32
  }
  func.func @transform_2(%arg0: i32, %arg1: i32, %arg2: memref<4xi32, #tpu.memory_space<smem>>) -> (i32, i32, i32) {
    %c0_i32 = arith.constant 0 : i32
    %c0_i32_0 = arith.constant 0 : i32
    %c0_i32_1 = arith.constant 0 : i32
    return %arg1, %c0_i32, %c0_i32_0 : i32, i32, i32
  }
  func.func @transform_3(%arg0: i32, %arg1: i32, %arg2: memref<4xi32, #tpu.memory_space<smem>>) -> (i32, i32, i32) {
    %c0_i32 = arith.constant 0 : i32
    %c0_i32_0 = arith.constant 0 : i32
    %c0_i32_1 = arith.constant 0 : i32
    return %arg1, %c0_i32, %c0_i32_0 : i32, i32, i32
  }
  func.func @transform_4(%arg0: i32, %arg1: i32, %arg2: memref<4xi32, #tpu.memory_space<smem>>) -> (i32, i32, i32, i32) {
    %c0_i32 = arith.constant 0 : i32
    %c0_i32_0 = arith.constant 0 : i32
    %c0_i32_1 = arith.constant 0 : i32
    %c0_i32_2 = arith.constant 0 : i32
    return %arg1, %c0_i32, %c0_i32_0, %c0_i32_1 : i32, i32, i32, i32
  }
  func.func @transform_5(%arg0: i32, %arg1: i32, %arg2: memref<4xi32, #tpu.memory_space<smem>>) -> (i32, i32, i32) {
    %c0_i32 = arith.constant 0 : i32
    %c0_i32_0 = arith.constant 0 : i32
    %c0_i32_1 = arith.constant 0 : i32
    return %arg1, %c0_i32, %c0_i32_0 : i32, i32, i32
  }
  func.func @transform_6(%arg0: i32, %arg1: i32, %arg2: memref<4xi32, #tpu.memory_space<smem>>) -> (i32, i32, i32) {
    %c0_i32 = arith.constant 0 : i32
    %c0_i32_0 = arith.constant 0 : i32
    %c0_i32_1 = arith.constant 0 : i32
    return %arg1, %c0_i32, %c0_i32_0 : i32, i32, i32
  }
  func.func @transform_7(%arg0: i32, %arg1: i32, %arg2: memref<4xi32, #tpu.memory_space<smem>>) -> (i32, i32, i32) {
    %c0_i32 = arith.constant 0 : i32
    %c0_i32_0 = arith.constant 0 : i32
    %c0_i32_1 = arith.constant 0 : i32
    return %arg1, %c0_i32, %c0_i32_0 : i32, i32, i32
  }
  func.func @transform_8(%arg0: i32, %arg1: i32, %arg2: memref<4xi32, #tpu.memory_space<smem>>) -> (i32, i32) {
    %c0_i32 = arith.constant 0 : i32
    %c0_i32_0 = arith.constant 0 : i32
    %c0_i32_1 = arith.constant 0 : i32
    return %c0_i32, %c0_i32_0 : i32, i32
  }
  func.func @transform_9(%arg0: i32, %arg1: i32, %arg2: memref<4xi32, #tpu.memory_space<smem>>) -> (i32, i32, i32) {
    %c0_i32 = arith.constant 0 : i32
    %c0_i32_0 = arith.constant 0 : i32
    %c0_i32_1 = arith.constant 0 : i32
    return %arg0, %c0_i32, %c0_i32_0 : i32, i32, i32
  }
}

</mosaic_0001>

<bundles_post_ra>
// kernel: tpu_custom_call.1
= control target key start
LH: loop header
LB: loop body
LE: loop exit
PB: predicated region body
PF: predicated region fallthrough
CT: control target
= control target key end

     0   :  { %s2511_s16 = smov [#allocation4]   ;;  %s3029_s0 = inlined_call_operand.vmem [shape: s32[4], index: 0, kind: input, shape index: {}]   ;;  %s3030_s1 = inlined_call_operand.vmem [shape: bf16[7,2,8,64], index: 1, kind: input, shape index: {}]   ;;  %s3031_s2 = inlined_call_operand.vmem [shape: f32[16,32], index: 2, kind: input, shape index: {}]   ;;  %s3032_s3 = inlined_call_operand.vmem [shape: bf16[4,64,32], index: 3, kind: input, shape index: {}]   ;;  %s3033_s4 = inlined_call_operand.vmem [shape: bf16[4,32,96], index: 4, kind: input, shape index: {}]   ;;  %s3034_s5 = inlined_call_operand.vmem [shape: bf16[4,4,8,32], index: 5, kind: input, shape index: {}]   ;;  %s3035_s6 = inlined_call_operand.vmem [shape: bf16[4,32,128], index: 6, kind: input, shape index: {}]   ;;  %s3036_s7 = inlined_call_operand.vmem [shape: bf16[4,128,32], index: 7, kind: input, shape index: {}]   ;;  %s3037_s8 = inlined_call_operand.vmem [shape: f32[4,9,128], index: 8, kind: input, shape index: {}]   ;;  %s3038_s9 = inlined_call_operand.vmem [shape: f32[2,32], index: 9, kind: input, shape index: {}]   ;;  %s3039_s10 = inlined_call_operand.hbm [shape: f32[2,16,32], index: 10, kind: output, shape index: {}]  }
   0x1   :  { %3053 = sst [smem:[#allocation20_spill]] %s3032_s3  ;;  %s16_s15 = sshll.u32 %s3029_s0, 4  ;;  %s17_s15 = int_to_ptr.vmem [resolvable:$true] %s16_s15 }
   0x2   :  { %3054 = sst [smem:[#allocation21_spill]] %s3033_s4 }
   0x3   :  { %3055 = sst [smem:[#allocation22_spill]] %s3034_s5 }
   0x4   :  { %3056 = sst [smem:[#allocation23_spill]] %s3039_s10 }
   0x5   :  { %19 = dma.vmem_to_smem %s17_s15, 16, %s2511_s16, [#allocation3] }
   0x6   :  { %2473 = dma.done.wait [#allocation3], 16 }
   0x7   :  { %2474 = vsyncadd [#allocation3], 4294967280 }
   0x8   :  { %22 = sfence }
   0x9   :  { %23 = vsyncpa [#allocation6], 0 }
   0xa   :  { %25 = vsyncpa [#allocation6 + $0x1], 0  ;;  %s2574_s17 = smov 0   ;;  %s2576_s18 = smov 0  }
   0xb   :  { %s2578_s19 = smov 0   ;;  %s2580_s20 = smov 0  }
   0xc   :  { %s2582_s21 = smov 0   ;;  %s2584_s22 = smov 0  }
   0xd   :  { %s2586_s0 = smov 0   ;;  %s2588_s23 = smov 0  }
   0xe LB: > { %3057 = sst [smem:[#allocation9_spill]] %s2481_s17  ;;  %s2104_s24 = sadd.s32 4294967295, %s2509_s23   ;;  %s2509_s23 = sphi %s2588_s23, %s31_s23   ;;  %s2505_s0 = sphi %s2586_s0, %s3090_s0   ;;  %s2501_s22 = sphi %s2584_s22, %s3089_s22   ;;  %s2497_s21 = sphi %s2582_s21, %s3088_s21   ;;  %s2493_s20 = sphi %s2580_s20, %s3087_s20   ;;  %s2489_s19 = sphi %s2578_s19, %s3086_s19   ;;  %s2485_s18 = sphi %s2576_s18, %s3085_s18   ;;  %s2481_s17 = sphi %s2574_s17, %s3084_s17  }
   0xf   : > { %3058 = sst [smem:[#allocation10_spill]] %s2485_s18  ;;  %s2105_s25 = sadd.s32 4294967294, %s2509_s23  }
  0x10   : > { %3059 = sst [smem:[#allocation11_spill]] %s2489_s19  ;;  %s40_s26 = sadd.s32 1, %s2501_s22 }
  0x11   : > { %3060 = sst [smem:[#allocation12_spill]] %s2501_s22  ;;  %p41_p0 = scmp.ge.s32.totalorder %s40_s26, 4 }
  0x12   : > { %3061 = sst [smem:[#allocation13_spill]] %s2505_s0  ;;  %s43_s27 = sadd.s32 1, %s2505_s0 }
  0x13   : > { %3062 = sst [smem:[#allocation14_spill]] %s2509_s23  ;;  %p288_p1 = scmp.ne.s32.totalorder %s2489_s19, %s2485_s18 }
  0x14   : > { %p289_p2 = scmp.eq.s32.totalorder %s2104_s24, 7  ;;  %s3092_s26 = smov (%p41_p0, %s40_s26), 0 }
  0x15   : > { %3063 = sst [smem:[#allocation15_spill]] %s3092_s26  ;;  %s3094_s27 = smov (!%p41_p0, %s43_s27), %s2505_s0 }
  0x16   : > { %p2623_p3 = por %p289_p2, %p288_p1  ;;  %p294_p4 = scmp.ne.s32.totalorder %s2485_s18, %s2481_s17 }
  0x17   : > { %p45_p5 = scmp.ge.s32.totalorder %s3094_s27, 2  ;;  %p295_p6 = scmp.eq.s32.totalorder %s2105_s25, 7 }
  0x18   : > { %s3064_s28 = scalar_select %p2623_p3, 1, 0 }
  0x19   : > { %p2108_p7 = scmp.ge.s32.totalorder %s2509_s23, 1  ;;  %p380_p8 = scmp.lt.s32.totalorder %s2509_s23, 9 }
  0x1a   : > { %3065 = sst [smem:[#allocation16_spill]] %s3064_s28  ;;  %s3096_s27 = smov (%p45_p5, %s3094_s27), 0 }
  0x1b   : > { %3066 = sst [smem:[#allocation17_spill]] %s3096_s27  ;;  %p2633_p9 = por %p295_p6, %p294_p4 }
  0x1c   : > { %p381_p10 = pnand %p2108_p7, %p380_p8  ;;  %s275_s30 = ssub.s32 %s2505_s0, %s3096_s27 }
  0x1d   : > { %s3067_s29 = scalar_select %p2633_p9, 1, 0 }
  0x1e   : > { %s278_s11 = sadd.s32 1, %s2489_s19  ;;  %p276_p11 = scmp.eq.s32.totalorder %s275_s30, 0 }
  0x1f   : > { %3068 = sst [smem:[#allocation18_spill]] %s3067_s29  ;;  %384 = sbr.rel (%p381_p10) target bundleno = 2597 (0xa25), region = 56 }
  0x20   : > { %s2641_s12 = scalar_select %p276_p11, %s2489_s19, %s278_s11  }
  0x21   : > { %s3044_s13 = sand.u32 (!%p381_p10), 1, %s2485_s18   ;;  %s450_s14 = sld [smem:[#allocation4 + %s2493_s20]] (!%p381_p10) }
  0x22   : > { %3069 = sst [smem:[#allocation19_spill]] %s2641_s12  ;;  %s2109_s15 = sshll.u32 (!%p381_p10), %s3044_s13, 4 }
  0x23   : > { %p453_p12 = scmp.lt.s32.totalorder (!%p381_p10), %s2497_s21, 1  ;;  %p460_p13 = scmp.lt.s32.totalorder (!%p381_p10), %s2493_s20, 3 }
  0x24   : > { %s3070_s3 = sld [smem:[#allocation20_spill]]  ;;  %s2686_s10 = scalar_lea.vmem [#allocation5], %s2109_s15 }
  0x25   : > { %s461_s16 = scalar_select %p460_p13, %s2493_s20, 3 }
  0x26   : > { %s454_s24 = scalar_select %p453_p12, %s2497_s21, 1 }
  0x27   : > { %p451_p0 = scmp.lt.s32.totalorder %s450_s14, 6  ;;  %s2224_s25 = sshll.u32 %s461_s16, 5 }
  0x28   : > { %s2225_s26 = sshll.u32 %s461_s16, 4  ;;  %s3071_s4 = sld [smem:[#allocation21_spill]] }
  0x29   : > { %s3098_s14 = smov (!%p451_p0, %s450_s14), 6  ;;  %s3072_s5 = sld [smem:[#allocation22_spill]] }
  0x2a   : > { %s2654_s27 = scalar_lea.vmem %s3070_s3, %s2224_s25  ;;  %s2110_s17 = sshll.u32 %s3098_s14, 1 }
  0x2b   : > { %s2669_s28 = scalar_lea.vmem %s3035_s6, %s2225_s26  ;;  %s456_s25 = sadd.s32 %s2110_s17, %s454_s24 }
  0x2c   : > { %s2228_s30 = sshll.u32 %s461_s16, 6  ;;  %s2111_s11 = sshll.u32 %s456_s25, 2 }
  0x2d   : > { %s2674_s22 = scalar_lea.vmem %s3036_s7, %s2228_s30  ;;  %s458_s19 = scalar_lea.vmem %s3030_s1, %s2111_s11 }
  0x2e   : > { %s2659_s12 = scalar_lea.vmem %s3071_s4, %s2225_s26  ;;  %s489_s14 = scalar_lea.vmem %s3037_s8, %s2225_s26 }
  0x2f   : > { %s2664_s29 = scalar_lea.vmem %s3072_s5, %s2225_s26  ;;  %v2682_v0 = vld [vmem:[%s489_s14] sm:$0xff]  ;;  %v2684_v1 = vld [vmem:[%s489_s14 + $0x8] sm:$0x1]  ;;  %p2124_p1 = scmp.ne.s32.totalorder %s2493_s20, 0 }
  0x31   : > { %496 = sbr.rel (%p2124_p1) target bundleno = 58 (0x3a), region = 60 }
  0x36   : > { %vm497_vm0 = vcmask 261120   ;;  %v499_v2 = vld [vmem:[%s3031_s2] sm:$0xff]  ;;  %v500_v3 = vld [vmem:[%s3031_s2 + $0x8] sm:$0xff]  ;;  %v2512_v4 = vmov 0.0  }
  0x37   : > { %498 = vst.msk [vmem:[#allocation2] sm:$0xff] %vm497_vm0, %v2512_v4 }
  0x38   : > { %501 = vst.msk [vmem:[#allocation2 + $0x8] sm:$0xff] %vm497_vm0, %v499_v2 }
  0x39   : > { %502 = vst.msk [vmem:[#allocation2 + $0x10] sm:$0xff] %vm497_vm0, %v500_v3 }
  0x3a PF: > { %v2233_v5 = vld [vmem:[%s2654_s27 + $0x18] sm:$0xff]  ;;  %v2232_v6 = vld [vmem:[%s2654_s27 + $0x10] sm:$0xff]  ;;  %v2231_v7 = vld [vmem:[%s2654_s27 + $0x8] sm:$0xff]  ;;  %vm537_vm1 = vcmask 523264   ;;  %vm556_vm2 = vcmask 261120   ;;  %v512_v12 = vperm.slane %v2682_v0, 0 }
  0x3b   : > { %545 = vmatpush.bf16.msra.mxu0 %v2233_v5  ;;  %v2230_v8 = vld [vmem:[%s2654_s27] sm:$0xff]  ;;  %v2513_v22 = vmov 32.0   ;;  %v2235_v44 = vld [vmem:[%s2659_s12 + $0x8] sm:$0xff]  ;;  %vm876_vm13 = vcmask 1043456   ;;  %vm1015_vm14 = vcmask 195584   ;;  %vm869_vm15 = vcmask 64512  }
  0x3c   : > { %v503_v9 = vld [vmem:[%s458_s19] sm:$0xf]  ;;  %2324 = vrcp.f32 %v2513_v22  ;;  %673 = vmatpush.bf16.msra.mxu1 %v2235_v44  ;;  %p2218_p2 = scmp.ne.s32.totalorder %s2493_s20, 3 }
  0x3d   : > { %v2234_v47 = vld [vmem:[%s2659_s12] sm:$0xff] }
  0x3e   : > { %v554_v14 = vld [vmem:[#allocation2] sm:$0xff] }
  0x3f   : > { %546 = vmatpush.bf16.msra.mxu0 %v2232_v6  ;;  %v559_v20 = vld [vmem:[#allocation2 + $0x8] sm:$0xff] }
  0x40   : > { %v560_v10 = vld [vmem:[#allocation2 + $0x10] sm:$0xff]  ;;  %v564_v21 = vsel %vm556_vm2, %v559_v20, 0.0  ;;  %674 = vmatpush.bf16.msra.mxu1 %v2234_v47 }
  0x41   : > { %v567_v11 = vsel %vm556_vm2, %v560_v10, 0.0 }
  0x42   : > { %568 = vadd.xlane.f32.xlu1 %v567_v11  ;;  %v2325_v23 = vpop.eup %2324 }
  0x43   : > { %547 = vmatpush.bf16.msra.mxu0 %v2231_v7  ;;  %v571_v24 = vmul.f32 32.0, %v2325_v23  ;;  %vm575_vm3 = vweird.f32 %v2325_v23  ;;  %v634_v7 = vperm.slane %v2682_v0, 1 }
  0x45   : > { %v572_v25 = vsub.f32 1.0, %v571_v24 }
  0x47   : > { %548 = vmatpush.bf16.msra.mxu0 %v2230_v8  ;;  %v573_v26 = vmul.f32 %v2325_v23, %v572_v25 }
  0x49   : > { %v574_v27 = vadd.f32 %v2325_v23, %v573_v26 }
  0x4a   : > { %2141 = vmatmul.msk.bf16.vlgmr.msra.gmra.mxu0 %vm537_vm1, %v503_v9 }
  0x4b   : > { %v2704_v28 = vsel %vm575_vm3, %v2325_v23, %v574_v27  ;;  %v648_v27 = vperm.slane %v2682_v0, 3 }
  0xb5   : > { %v569_v33 = vpop.xlane.xlu1 %568 }
  0xb6   : > { %v579_v37 = vmul.f32 %v2704_v28, %v569_v33 }
  0xb8   : > { %v2710_v39 = vsub.f32 %v560_v10, %v579_v37 }
  0xba   : > { %v585_v42 = vmul.f32 %v2710_v39, %v2710_v39 }
  0xbc   : > { %v592_v43 = vsel %vm556_vm2, %v585_v42, 0.0 }
  0xc7   : > { %v550_v13 = vpop.f32.mrf.mxu0 }
  0xc8   : > { %v551_v15 = vadd.f32 %v550_v13, %v512_v12 }
  0xca   : > { %v555_v16 = vadd.f32 %v554_v14, %v551_v15  ;;  %v638_v14 = vperm.slane %v2682_v0, 2 }
  0xcc   : > { %557 = vst.msk [vmem:[#allocation2] sm:$0xff] %vm556_vm2, %v555_v16 }
  0xcf   : > { %v552_v17 = vpop.f32.mrf.mxu0 }
  0xd3   : > { %v558_v18 = vld [vmem:[#allocation2] sm:$0xff] }
  0xd4   : > { %v561_v19 = vsel %vm556_vm2, %v558_v18, 0.0 }
  0xd5   : > { %562 = vadd.xlane.f32.xlu0 %v561_v19 }
  0xdd   : > { %565 = vadd.xlane.f32.xlu0 %v564_v21 }
 0x148   : > { %v563_v29 = vpop.xlane.xlu0 %562 }
 0x149   : > { %v577_v30 = vmul.f32 %v2704_v28, %v563_v29 }
 0x14b   : > { %v580_v31 = vsub.f32 %v558_v18, %v577_v30 }
 0x14d   : > { %v583_v32 = vmul.f32 %v580_v31, %v580_v31 }
 0x14f   : > { %v586_v34 = vsel %vm556_vm2, %v583_v32, 0.0 }
 0x150   : > { %587 = vadd.xlane.f32.xlu1 %v586_v34  ;;  %v566_v35 = vpop.xlane.xlu0 %565 }
 0x151   : > { %v578_v36 = vmul.f32 %v2704_v28, %v566_v35 }
 0x153   : > { %v581_v38 = vsub.f32 %v559_v20, %v578_v36 }
 0x155   : > { %v584_v40 = vmul.f32 %v581_v38, %v581_v38 }
 0x157   : > { %v589_v41 = vsel %vm556_vm2, %v584_v40, 0.0 }
 0x158   : > { %590 = vadd.xlane.f32.xlu2 %v589_v41 }
 0x160   : > { %593 = vadd.xlane.f32.xlu2 %v592_v43 }
 0x1c3   : > { %v588_v45 = vpop.xlane.xlu1 %587 }
 0x1c4   : > { %v595_v46 = vmul.f32 %v588_v45, %v2704_v28 }
 0x1c6   : > { %v598_v48 = vadd.f32 1e-05, %v595_v46 }
 0x1c8   : > { %2326 = vrsqrt.f32 %v598_v48  ;;  %vm607_vm5 = vweird.f32 %v598_v48 }
 0x1cb   : > { %v591_v49 = vpop.xlane.xlu2 %590 }
 0x1cc   : > { %v596_v50 = vmul.f32 %v591_v49, %v2704_v28 }
 0x1ce   : > { %v2327_v51 = vpop.eup %2326  ;;  %v599_v52 = vadd.f32 1e-05, %v596_v50 }
 0x1cf   : > { %v602_v53 = vmul.f32 %v2327_v51, %v598_v48  ;;  %vm608_vm4 = vweird.f32 %v2327_v51 }
 0x1d0   : > { %2328 = vrsqrt.f32 %v599_v52  ;;  %vm609_vm6 = vmor %vm607_vm5, %vm608_vm4  ;;  %vm617_vm8 = vweird.f32 %v599_v52 }
 0x1d1   : > { %v603_v54 = vmul.f32 %v2327_v51, %v602_v53 }
 0x1d3   : > { %v604_v55 = vmul.f32 0.5, %v603_v54  ;;  %v594_v56 = vpop.xlane.xlu2 %593 }
 0x1d4   : > { %v597_v57 = vmul.f32 %v594_v56, %v2704_v28 }
 0x1d5   : > { %v605_v58 = vsub.f32 1.5, %v604_v55 }
 0x1d6   : > { %v2329_v59 = vpop.eup %2328  ;;  %v600_v60 = vadd.f32 1e-05, %v597_v57 }
 0x1d7   : > { %v606_v61 = vmul.f32 %v2327_v51, %v605_v58  ;;  %v612_v62 = vmul.f32 %v2329_v59, %v599_v52  ;;  %vm618_vm7 = vweird.f32 %v2329_v59 }
 0x1d8   : > { %2330 = vrsqrt.f32 %v600_v60  ;;  %vm619_vm9 = vmor %vm617_vm8, %vm618_vm7  ;;  %vm627_vm10 = vweird.f32 %v600_v60 }
 0x1d9   : > { %v613_v63 = vmul.f32 %v2329_v59, %v612_v62  ;;  %v610_v2 = vsel %vm609_vm6, %v2327_v51, %v606_v61 }
 0x1da   : > { %v631_v6 = vmul.f32 %v610_v2, %v580_v31 }
 0x1db   : > { %v614_v3 = vmul.f32 0.5, %v613_v63 }
 0x1dc   : > { %v635_v13 = vmul.f32 %v634_v7, %v631_v6 }
 0x1dd   : > { %v615_v4 = vsub.f32 1.5, %v614_v3 }
 0x1de   : > { %v2331_v5 = vpop.eup %2330  ;;  %v639_v18 = vadd.f32 %v638_v14, %v635_v13 }
 0x1df   : > { %v616_v8 = vmul.f32 %v2329_v59, %v615_v4  ;;  %v622_v9 = vmul.f32 %v2331_v5, %v600_v60  ;;  %vm628_vm11 = vweird.f32 %v2331_v5 }
 0x1e0   : > { %vm629_vm12 = vmor %vm627_vm10, %vm628_vm11 }
 0x1e1   : > { %v620_v10 = vsel %vm619_vm9, %v2329_v59, %v616_v8  ;;  %v623_v11 = vmul.f32 %v2331_v5, %v622_v9 }
 0x1e2   : > { %v632_v12 = vmul.f32 %v620_v10, %v581_v38 }
 0x1e3   : > { %v624_v15 = vmul.f32 0.5, %v623_v11 }
 0x1e4   : > { %v636_v16 = vmul.f32 %v634_v7, %v632_v12 }
 0x1e5   : > { %v625_v17 = vsub.f32 1.5, %v624_v15 }
 0x1e6   : > { %v640_v19 = vadd.f32 %v638_v14, %v636_v16 }
 0x1e7   : > { %v626_v20 = vmul.f32 %v2331_v5, %v625_v17 }
 0x1e8   : > { %v642_v21 = vpack.c.bf16 %v640_v19, %v639_v18 }
 0x1e9   : > { %v630_v22 = vsel %vm629_vm12, %v2331_v5, %v626_v20 }
 0x1ea   : > { %2150 = vmatmul.msk.bf16.vlgmr.msra.gmra.mxu1 %vm556_vm2, %v642_v21  ;;  %v633_v23 = vmul.f32 %v630_v22, %v2710_v39 }
 0x1ec   : > { %v637_v24 = vmul.f32 %v634_v7, %v633_v23 }
 0x1ee   : > { %v641_v25 = vadd.f32 %v638_v14, %v637_v24 }
 0x1f0   : > { %v643_v26 = vpack.c.bf16 %v641_v25, %v641_v25 }
 0x1fa   : > { %2151 = vmatmul.msk.bf16.gmra.mxu1 %vm556_vm2, %v643_v26 }
 0x267   : > { %v676_v29 = vpop.f32.mrf.mxu1 }
 0x268   : > { %v677_v30 = vadd.f32 %v676_v29, %v648_v27 }
 0x26a   : > { %685 = vxpose.xlu0.b32.start [1/3] (short) (narrow) %v677_v30, 96 }
 0x26f   : > { %v678_v31 = vpop.f32.mrf.mxu1 }
 0x270   : > { %v679_v32 = vadd.f32 %v678_v31, %v648_v27 }
 0x272   : > { %686 = vxpose.xlu0.b32.cont [2/3] (short) (narrow) %v679_v32, 96 }
 0x277   : > { %v681_v33 = vpop.f32.mrf.mxu1 }
 0x278   : > { %v682_v34 = vadd.f32 %v681_v33, %v648_v27 }
 0x27a   : > { %687 = vxpose.xlu0.b32.end [3/3] (short) (narrow) %v682_v34, 96 }
 0x27f   : > { %v683_v35 = vpop.f32.mrf.mxu1 }
 0x30e   : > { %v701_v36 = vpop.trf.xlu0 }
 0x30f   : > { %717 = vxpose.xlu1.b32.start.end [1/1] (short) (narrow) %v701_v36, 24 }
 0x316   : > { %v702_v37 = vpop.trf.xlu0 }
 0x31e   : > { %v703_v38 = vpop.trf.xlu0 }
 0x31f   : > { %781 = vxpose.xlu0.b32.start.end [1/1] (short) (narrow) %v703_v38, 24 }
 0x326   : > { %v704_v39 = vpop.trf.xlu0 }
 0x327   : > { %813 = vxpose.xlu2.b32.start.end [1/1] (short) (narrow) %v704_v39, 24 }
 0x32e   : > { %v705_v40 = vpop.trf.xlu0 }
 0x32f   : > { %v857_v41 = vpack.c.bf16 %v705_v40, %v705_v40 }
 0x331   : > { %v878_v42 = vsel %vm876_vm13, %v857_v41, 0 }
 0x332   : > { %887 = vmatpush.bf16.msra.mxu2 %v878_v42 }
 0x336   : > { %v706_v43 = vpop.trf.xlu0 }
 0x337   : > { %v858_v48 = vpack.c.bf16 %v706_v43, %v706_v43 }
 0x339   : > { %v913_v49 = vsel %vm876_vm13, %v858_v48, 0 }
 0x33a   : > { %922 = vmatpush.bf16.msra.mxu3 %v913_v49 }
 0x33e   : > { %v707_v44 = vpop.trf.xlu0 }
 0x33f   : > { %749 = vxpose.xlu2.b32.start.end [1/1] (short) (narrow) %v702_v37, 24  ;;  %v859_v52 = vpack.c.bf16 %v707_v44, %v707_v44 }
 0x341   : > { %v948_v54 = vsel %vm876_vm13, %v859_v52, 0 }
 0x342   : > { %957 = vmatpush.bf16.msrb.mxu0 %v948_v54 }
 0x346   : > { %v708_v45 = vpop.trf.xlu0 }
 0x347   : > { %v860_v55 = vpack.c.bf16 %v708_v45, %v708_v45 }
 0x349   : > { %v983_v56 = vsel %vm876_vm13, %v860_v55, 0 }
 0x34a   : > { %992 = vmatpush.bf16.msrb.mxu2 %v983_v56 }
 0x34e   : > { %v709_v46 = vpop.trf.xlu0 }
 0x34f   : > { %v1316_v57 = vpack.c.bf16 %v709_v46, %v709_v46 }
 0x351   : > { %v1335_v58 = vsel %vm1015_vm14, %v1316_v57, 0 }
 0x352   : > { %1344 = vmatpush.bf16.xpose.msrb.mxu3 %v1335_v58 }
 0x356   : > { %v710_v47 = vpop.trf.xlu0 }
 0x357   : > { %v1317_v60 = vpack.c.bf16 %v710_v47, %v710_v47 }
 0x359   : > { %v1370_v62 = vsel %vm1015_vm14, %v1317_v60, 0 }
 0x35a   : > { %1379 = vmatpush.bf16.xpose.msrb.mxu1 %v1370_v62 }
 0x35e   : > { %v711_v50 = vpop.trf.xlu0 }
 0x35f   : > { %v1318_v51 = vpack.c.bf16 %v711_v50, %v711_v50 }
 0x361   : > { %v1405_v53 = vsel %vm1015_vm14, %v1318_v51, 0 }
 0x362   : > { %1414 = vmatpush.bf16.xpose.msra.mxu0 %v1405_v53 }
 0x366   : > { %v712_v61 = vpop.trf.xlu0 }
 0x367   : > { %v1319_v4 = vpack.c.bf16 %v712_v61, %v712_v61 }
 0x369   : > { %v1440_v8 = vsel %vm1015_vm14, %v1319_v4, 0 }
 0x3b3   : > { %v733_v59 = vpop.trf.xlu1 }
 0x3b4   : > { %v845_v63 = vpack.c.bf16 %v733_v59, %v733_v59 }
 0x3b6   : > { %v864_v5 = vunpack.c.l.b16 %v845_v63 }
 0x3bb   : > { %v734_v2 = vpop.trf.xlu1 }
 0x3bc   : > { %v846_v3 = vpack.c.bf16 %v734_v2, %v734_v2 }
 0x3be   : > { %v865_v6 = vunpack.c.l.b16 %v846_v3 }
 0x3c0   : > { %v867_v7 = vpack.c.b16 %v865_v6, %v864_v5  ;;  %v829_v9 = vpop.trf.xlu2 }
 0x3c1   : > { %v854_v27 = vpack.c.bf16 %v829_v9, %v829_v9 }
 0x3c2   : > { %2152 = vmatmul.msk.bf16.vlgmr.msra.gmra.mxu2 %vm869_vm15, %v867_v7 }
 0x3c3   : > { %v797_v10 = vpop.trf.xlu0  ;;  %v735_v11 = vpop.trf.xlu1  ;;  %1449 = vmatpush.bf16.xpose.msra.mxu2 %v1440_v8  ;;  %v971_v31 = vunpack.c.l.b16 %v854_v27 }
 0x3c4   : > { %v847_v12 = vpack.c.bf16 %v735_v11, %v735_v11  ;;  %v851_v13 = vpack.c.bf16 %v797_v10, %v797_v10 }
 0x3c6   : > { %v866_v15 = vunpack.c.l.b16 %v847_v12  ;;  %v936_v17 = vunpack.c.l.b16 %v851_v13 }
 0x3c8   : > { %v830_v14 = vpop.trf.xlu2  ;;  %v868_v19 = vpack.c.b16 %v866_v15, %v866_v15 }
 0x3c9   : > { %v855_v25 = vpack.c.bf16 %v830_v14, %v830_v14 }
 0x3cb   : > { %v798_v16 = vpop.trf.xlu0  ;;  %v972_v30 = vunpack.c.l.b16 %v855_v25 }
 0x3cc   : > { %v852_v18 = vpack.c.bf16 %v798_v16, %v798_v16 }
 0x3cd   : > { %v974_v34 = vpack.c.b16 %v972_v30, %v971_v31 }
 0x3ce   : > { %v937_v20 = vunpack.c.l.b16 %v852_v18 }
 0x3d0   : > { %v939_v21 = vpack.c.b16 %v937_v20, %v936_v17  ;;  %v831_v22 = vpop.trf.xlu2 }
 0x3d1   : > { %v856_v40 = vpack.c.bf16 %v831_v22, %v831_v22 }
 0x3d2   : > { %2153 = vmatmul.msk.bf16.gmra.mxu2 %vm869_vm15, %v868_v19  ;;  %2156 = vmatmul.msk.bf16.vlgmr.msrb.gmra.mxu0 %vm869_vm15, %v939_v21 }
 0x3d3   : > { %v799_v23 = vpop.trf.xlu0  ;;  %v973_v43 = vunpack.c.l.b16 %v856_v40 }
 0x3d4   : > { %v853_v24 = vpack.c.bf16 %v799_v23, %v799_v23 }
 0x3d5   : > { %v975_v45 = vpack.c.b16 %v973_v43, %v973_v43 }
 0x3d6   : > { %v938_v29 = vunpack.c.l.b16 %v853_v24 }
 0x3d8   : > { %v765_v26 = vpop.trf.xlu2  ;;  %v940_v32 = vpack.c.b16 %v938_v29, %v938_v29 }
 0x3d9   : > { %v848_v33 = vpack.c.bf16 %v765_v26, %v765_v26 }
 0x3db   : > { %v901_v37 = vunpack.c.l.b16 %v848_v33 }
 0x3e0   : > { %v766_v35 = vpop.trf.xlu2 }
 0x3e1   : > { %v849_v36 = vpack.c.bf16 %v766_v35, %v766_v35 }
 0x3e2   : > { %2157 = vmatmul.msk.bf16.gmra.mxu0 %vm869_vm15, %v940_v32  ;;  %2158 = vmatmul.msk.bf16.vlgmr.msrb.gmra.mxu2 %vm869_vm15, %v974_v34 }
 0x3e3   : > { %v902_v38 = vunpack.c.l.b16 %v849_v36 }
 0x3e5   : > { %v904_v39 = vpack.c.b16 %v902_v38, %v901_v37 }
 0x3e7   : > { %2154 = vmatmul.msk.bf16.vlgmr.msra.gmra.mxu3 %vm869_vm15, %v904_v39 }
 0x3e8   : > { %v767_v41 = vpop.trf.xlu2 }
 0x3e9   : > { %v850_v42 = vpack.c.bf16 %v767_v41, %v767_v41 }
 0x3eb   : > { %v903_v44 = vunpack.c.l.b16 %v850_v42 }
 0x3ed   : > { %v905_v46 = vpack.c.b16 %v903_v44, %v903_v44 }
 0x3f2   : > { %2159 = vmatmul.msk.bf16.gmra.mxu2 %vm869_vm15, %v975_v45 }
 0x3f7   : > { %2155 = vmatmul.msk.bf16.gmra.mxu3 %vm869_vm15, %v905_v46 }
 0x445   : > { %v889_v47 = vpop.f32.mrf.mxu2 }
 0x446   : > { %v1003_v48 = vmul.f32 0.35355338, %v889_v47 }
 0x448   : > { %v1016_v49 = vsel %vm1015_vm14, %v1003_v48, -inf }
 0x449   : > { %1017 = vmax.xlane.f32.xlu1 %v1016_v49 }
 0x44d   : > { %v891_v50 = vpop.f32.mrf.mxu2 }
 0x44e   : > { %v1004_v51 = vmul.f32 0.35355338, %v891_v50 }
 0x44f   : > { %v959_v52 = vpop.f32.mrf.mxu0 }
 0x450   : > { %v1019_v53 = vsel %vm1015_vm14, %v1004_v51, -inf  ;;  %v1009_v18 = vmul.f32 0.35355338, %v959_v52 }
 0x451   : > { %1020 = vmax.xlane.f32.xlu2 %v1019_v53 }
 0x452   : > { %v1034_v20 = vsel %vm1015_vm14, %v1009_v18, -inf }
 0x455   : > { %v894_v54 = vpop.f32.mrf.mxu2 }
 0x456   : > { %v2762_v21 = vmul.f32 0.35355338, %v894_v54 }
 0x457   : > { %v961_v55 = vpop.f32.mrf.mxu0 }
 0x458   : > { %v2745_v56 = vmul.f32 0.35355338, %v961_v55  ;;  %v1022_v22 = vsel %vm1015_vm14, %v2762_v21, -inf }
 0x45a   : > { %v1037_v57 = vsel %vm1015_vm14, %v2745_v56, -inf }
 0x45b   : > { %1038 = vmax.xlane.f32.xlu2 %v1037_v57 }
 0x45d   : > { %v896_v58 = vpop.f32.mrf.mxu2 }
 0x45f   : > { %v964_v59 = vpop.f32.mrf.mxu0 }
 0x460   : > { %v2749_v60 = vmul.f32 0.35355338, %v964_v59 }
 0x462   : > { %v1040_v61 = vsel %vm1015_vm14, %v2749_v60, -inf }
 0x463   : > { %1041 = vmax.xlane.f32.xlu2 %v1040_v61 }
 0x465   : > { %v994_v62 = vpop.f32.mrf.mxu2 }
 0x466   : > { %v1012_v63 = vmul.f32 0.35355338, %v994_v62 }
 0x467   : > { %v966_v2 = vpop.f32.mrf.mxu0 }
 0x468   : > { %v1043_v3 = vsel %vm1015_vm14, %v1012_v63, -inf }
 0x469   : > { %1044 = vmax.xlane.f32.xlu0 %v1043_v3 }
 0x46a   : > { %v924_v4 = vpop.f32.mrf.mxu3 }
 0x46b   : > { %v1006_v5 = vmul.f32 0.35355338, %v924_v4 }
 0x46d   : > { %v996_v6 = vpop.f32.mrf.mxu2  ;;  %v1025_v7 = vsel %vm1015_vm14, %v1006_v5, -inf }
 0x46e   : > { %1026 = vmax.xlane.f32.xlu1 %v1025_v7  ;;  %v1013_v8 = vmul.f32 0.35355338, %v996_v6 }
 0x470   : > { %v1046_v11 = vsel %vm1015_vm14, %v1013_v8, -inf }
 0x472   : > { %v926_v9 = vpop.f32.mrf.mxu3 }
 0x473   : > { %v1007_v14 = vmul.f32 0.35355338, %v926_v9 }
 0x475   : > { %v999_v10 = vpop.f32.mrf.mxu2  ;;  %v1028_v17 = vsel %vm1015_vm14, %v1007_v14, -inf }
 0x476   : > { %v2756_v12 = vmul.f32 0.35355338, %v999_v10  ;;  %1047 = vmax.xlane.f32.xlu1 %v1046_v11 }
 0x478   : > { %v1049_v13 = vsel %vm1015_vm14, %v2756_v12, -inf }
 0x479   : > { %1050 = vmax.xlane.f32.xlu2 %v1049_v13 }
 0x47a   : > { %v929_v15 = vpop.f32.mrf.mxu3 }
 0x47b   : > { %v2766_v23 = vmul.f32 0.35355338, %v929_v15 }
 0x47d   : > { %v1001_v16 = vpop.f32.mrf.mxu2  ;;  %v1031_v24 = vsel %vm1015_vm14, %v2766_v23, -inf }
 0x47e   : > { %1029 = vmax.xlane.f32.xlu1 %v1028_v17 }
 0x482   : > { %v931_v19 = vpop.f32.mrf.mxu3 }
 0x486   : > { %1035 = vmax.xlane.f32.xlu1 %v1034_v20 }
 0x48e   : > { %1023 = vmax.xlane.f32.xlu1 %v1022_v22 }
 0x496   : > { %1032 = vmax.xlane.f32.xlu1 %v1031_v24 }
 0x4bc   : > { %v1018_v25 = vpop.xlane.xlu1 %1017 }
 0x4bd   : > { %v1052_v26 = vsub.f32 %v1003_v48, %v1018_v25 }
 0x4bf   : > { %v1064_v27 = vmul.f32 1.442695, %v1052_v26 }
 0x4c1   : > { %2332 = vpow2.f32 %v1064_v27 }
 0x4c4   : > { %v1021_v29 = vpop.xlane.xlu2 %1020 }
 0x4c5   : > { %v1053_v30 = vsub.f32 %v1004_v51, %v1021_v29 }
 0x4c7   : > { %v2770_v31 = vpop.eup %2332  ;;  %v1066_v32 = vmul.f32 1.442695, %v1053_v30 }
 0x4c8   : > { %v1088_v33 = vsel %vm1015_vm14, %v2770_v31, 0.0 }
 0x4c9   : > { %2334 = vpow2.f32 %v1066_v32  ;;  %1089 = vadd.xlane.f32.xlu2 %v1088_v33 }
 0x4ce   : > { %v1039_v43 = vpop.xlane.xlu2 %1038 }
 0x4cf   : > { %v2774_v34 = vpop.eup %2334  ;;  %v1059_v54 = vsub.f32 %v2745_v56, %v1039_v43 }
 0x4d0   : > { %v1091_v35 = vsel %vm1015_vm14, %v2774_v34, 0.0 }
 0x4d1   : > { %1092 = vadd.xlane.f32.xlu1 %v1091_v35  ;;  %v1078_v58 = vmul.f32 1.442695, %v1059_v54 }
 0x4d6   : > { %v1042_v50 = vpop.xlane.xlu2 %1041 }
 0x4d7   : > { %v1060_v9 = vsub.f32 %v2749_v60, %v1042_v50 }
 0x4d9   : > { %v1080_v13 = vmul.f32 1.442695, %v1060_v9 }
 0x4dc   : > { %v1045_v36 = vpop.xlane.xlu0 %1044 }
 0x4dd   : > { %v1061_v37 = vsub.f32 %v1012_v63, %v1045_v36 }
 0x4df   : > { %v1082_v38 = vmul.f32 1.442695, %v1061_v37 }
 0x4e1   : > { %2336 = vpow2.f32 %v1082_v38  ;;  %v1027_v39 = vpop.xlane.xlu1 %1026 }
 0x4e2   : > { %v1055_v40 = vsub.f32 %v1006_v5, %v1027_v39 }
 0x4e4   : > { %v1070_v41 = vmul.f32 1.442695, %v1055_v40 }
 0x4e6   : > { %2338 = vpow2.f32 %v1070_v41 }
 0x4e7   : > { %v2778_v42 = vpop.eup %2336 }
 0x4e8   : > { %v1115_v44 = vsel %vm1015_vm14, %v2778_v42, 0.0 }
 0x4e9   : > { %v1048_v45 = vpop.xlane.xlu1 %1047  ;;  %1116 = vadd.xlane.f32.xlu1 %v1115_v44 }
 0x4ea   : > { %v1062_v46 = vsub.f32 %v1013_v8, %v1048_v45 }
 0x4ec   : > { %v1084_v47 = vmul.f32 1.442695, %v1062_v46  ;;  %v2782_v48 = vpop.eup %2338  ;;  %v1051_v59 = vpop.xlane.xlu2 %1050 }
 0x4ed   : > { %v1097_v49 = vsel %vm1015_vm14, %v2782_v48, 0.0  ;;  %v1063_v2 = vsub.f32 %v2756_v12, %v1051_v59 }
 0x4ee   : > { %2340 = vpow2.f32 %v1084_v47 }
 0x4ef   : > { %v1086_v56 = vmul.f32 1.442695, %v1063_v2 }
 0x4f1   : > { %v1030_v51 = vpop.xlane.xlu1 %1029  ;;  %1098 = vadd.xlane.f32.xlu1 %v1097_v49 }
 0x4f2   : > { %v1056_v52 = vsub.f32 %v1007_v14, %v1030_v51 }
 0x4f4   : > { %v2786_v53 = vpop.eup %2340  ;;  %v1072_v55 = vmul.f32 1.442695, %v1056_v52 }
 0x4f5   : > { %v1118_v57 = vsel %vm1015_vm14, %v2786_v53, 0.0 }
 0x4f6   : > { %2342 = vpow2.f32 %v1072_v55  ;;  %1119 = vadd.xlane.f32.xlu2 %v1118_v57 }
 0x4f7   : > { %2344 = vpow2.f32 %v1078_v58 }
 0x4f9   : > { %v1036_v61 = vpop.xlane.xlu1 %1035 }
 0x4fa   : > { %v1058_v62 = vsub.f32 %v1009_v18, %v1036_v61 }
 0x4fc   : > { %v2791_v63 = vpop.eup %2342  ;;  %v1076_v3 = vmul.f32 1.442695, %v1058_v62 }
 0x4fd   : > { %v1100_v4 = vsel %vm1015_vm14, %v2791_v63, 0.0  ;;  %v2796_v6 = vpop.eup %2344 }
 0x4fe   : > { %2346 = vpow2.f32 %v1076_v3  ;;  %1101 = vadd.xlane.f32.xlu2 %v1100_v4  ;;  %v1109_v11 = vsel %vm1015_vm14, %v2796_v6, 0.0 }
 0x4ff   : > { %2348 = vpow2.f32 %v1086_v56 }
 0x501   : > { %v1024_v5 = vpop.xlane.xlu1 %1023 }
 0x502   : > { %v1054_v7 = vsub.f32 %v2762_v21, %v1024_v5 }
 0x504   : > { %v2799_v8 = vpop.eup %2346  ;;  %v1068_v10 = vmul.f32 1.442695, %v1054_v7 }
 0x505   : > { %v1106_v12 = vsel %vm1015_vm14, %v2799_v8, 0.0  ;;  %v2806_v15 = vpop.eup %2348 }
 0x506   : > { %2350 = vpow2.f32 %v1068_v10  ;;  %1110 = vadd.xlane.f32.xlu2 %v1109_v11  ;;  %1107 = vadd.xlane.f32.xlu1 %v1106_v12  ;;  %v1121_v18 = vsel %vm1015_vm14, %v2806_v15, 0.0 }
 0x507   : > { %2352 = vpow2.f32 %v1080_v13 }
 0x509   : > { %v1033_v14 = vpop.xlane.xlu1 %1032 }
 0x50a   : > { %v1057_v16 = vsub.f32 %v2766_v23, %v1033_v14 }
 0x50c   : > { %v2809_v17 = vpop.eup %2350  ;;  %v1074_v60 = vmul.f32 1.442695, %v1057_v16 }
 0x50d   : > { %v1094_v19 = vsel %vm1015_vm14, %v2809_v17, 0.0  ;;  %v2815_v20 = vpop.eup %2352 }
 0x50e   : > { %2354 = vpow2.f32 %v1074_v60  ;;  %1122 = vadd.xlane.f32.xlu2 %v1121_v18  ;;  %1095 = vadd.xlane.f32.xlu1 %v1094_v19  ;;  %v1112_v22 = vsel %vm1015_vm14, %v2815_v20, 0.0 }
 0x514   : > { %v2817_v21 = vpop.eup %2354 }
 0x515   : > { %v1103_v23 = vsel %vm1015_vm14, %v2817_v21, 0.0 }
 0x516   : > { %1113 = vadd.xlane.f32.xlu2 %v1112_v22  ;;  %1104 = vadd.xlane.f32.xlu1 %v1103_v23 }
 0x53c   : > { %v1090_v24 = vpop.xlane.xlu2 %1089 }
 0x53d   : > { %2356 = vrcp.f32 %v1090_v24  ;;  %v1135_v32 = vand.u32 2147483648, %v1090_v24  ;;  %vm1129_vm1 = vweird.f32 %v1090_v24  ;;  %v1133_v35 = vand.u32 2147483647, %v1090_v24 }
 0x53f   : > { %v1136_v39 = vor.u32 1.1754944e-38, %v1135_v32  ;;  %vm1134_vm4 = vcmp.eq.f32.partialorder %v1133_v35, 8.507059e+37 }
 0x543   : > { %v2357_v25 = vpop.eup %2356 }
 0x544   : > { %v1125_v26 = vmul.f32 %v2357_v25, %v1090_v24  ;;  %v1093_v27 = vpop.xlane.xlu1 %1092  ;;  %vm1130_vm0 = vweird.f32 %v2357_v25 }
 0x545   : > { %2358 = vrcp.f32 %v1093_v27  ;;  %vm1131_vm3 = vmor %vm1129_vm1, %vm1130_vm0  ;;  %v1150_v43 = vand.u32 2147483648, %v1093_v27  ;;  %v1148_v45 = vand.u32 2147483647, %v1093_v27  ;;  %vm1144_vm6 = vweird.f32 %v1093_v27 }
 0x546   : > { %v1126_v29 = vsub.f32 1.0, %v1125_v26 }
 0x547   : > { %v1151_v49 = vor.u32 1.1754944e-38, %v1150_v43  ;;  %vm1149_vm8 = vcmp.eq.f32.partialorder %v1148_v45, 8.507059e+37 }
 0x548   : > { %v1127_v30 = vmul.f32 %v2357_v25, %v1126_v29 }
 0x54a   : > { %v1128_v33 = vadd.f32 %v2357_v25, %v1127_v30 }
 0x54b   : > { %v2359_v36 = vpop.eup %2358 }
 0x54c   : > { %v1132_v37 = vsel %vm1131_vm3, %v2357_v25, %v1128_v33  ;;  %v1140_v38 = vmul.f32 %v2359_v36, %v1093_v27  ;;  %vm1145_vm5 = vweird.f32 %v2359_v36 }
 0x54d   : > { %v1137_v41 = vsel %vm1134_vm4, %v1136_v39, %v1132_v37  ;;  %vm1146_vm7 = vmor %vm1144_vm6, %vm1145_vm5 }
 0x54e   : > { %v1141_v40 = vsub.f32 1.0, %v1140_v38  ;;  %v1138_v47 = vmul.f32 %v2770_v31, %v1137_v41 }
 0x550   : > { %v1142_v44 = vmul.f32 %v2359_v36, %v1141_v40  ;;  %v1304_v54 = vpack.c.bf16 %v1138_v47, %v1138_v47 }
 0x552   : > { %v1143_v46 = vadd.f32 %v2359_v36, %v1142_v44  ;;  %v1323_v57 = vunpack.c.l.b16 %v1304_v54 }
 0x554   : > { %v1147_v50 = vsel %vm1146_vm7, %v2359_v36, %v1143_v46 }
 0x555   : > { %v1152_v51 = vsel %vm1149_vm8, %v1151_v49, %v1147_v50 }
 0x556   : > { %v1153_v52 = vmul.f32 %v2774_v34, %v1152_v51 }
 0x558   : > { %v1305_v55 = vpack.c.bf16 %v1153_v52, %v1153_v52 }
 0x55a   : > { %v1324_v58 = vunpack.c.l.b16 %v1305_v55 }
 0x55c   : > { %v1117_v59 = vpop.xlane.xlu1 %1116  ;;  %v1326_v61 = vpack.c.b16 %v1324_v58, %v1323_v57 }
 0x55d   : > { %2360 = vrcp.f32 %v1117_v59  ;;  %v1270_v9 = vand.u32 2147483648, %v1117_v59  ;;  %vm1264_vm10 = vweird.f32 %v1117_v59  ;;  %v1268_v11 = vand.u32 2147483647, %v1117_v59 }
 0x55e   : > { %2160 = vmatmul.msk.bf16.vlgmr.msrb.gmra.mxu3 %vm1015_vm14, %v1326_v61 }
 0x55f   : > { %v1271_v60 = vor.u32 1.1754944e-38, %v1270_v9  ;;  %vm1269_vm12 = vcmp.eq.f32.partialorder %v1268_v11, 8.507059e+37 }
 0x563   : > { %v2361_v62 = vpop.eup %2360 }
 0x564   : > { %v1260_v2 = vmul.f32 %v2361_v62, %v1117_v59  ;;  %v1099_v3 = vpop.xlane.xlu1 %1098  ;;  %vm1265_vm9 = vweird.f32 %v2361_v62 }
 0x565   : > { %2362 = vrcp.f32 %v1099_v3  ;;  %vm1266_vm11 = vmor %vm1264_vm10, %vm1265_vm9  ;;  %v1180_v27 = vand.u32 2147483648, %v1099_v3  ;;  %vm1174_vm4 = vweird.f32 %v1099_v3  ;;  %v1178_v33 = vand.u32 2147483647, %v1099_v3 }
 0x566   : > { %v1261_v31 = vsub.f32 1.0, %v1260_v2 }
 0x567   : > { %v1181_v41 = vor.u32 1.1754944e-38, %v1180_v27  ;;  %vm1179_vm8 = vcmp.eq.f32.partialorder %v1178_v33, 8.507059e+37 }
 0x568   : > { %v1262_v4 = vmul.f32 %v2361_v62, %v1261_v31 }
 0x569   : > { %v1120_v56 = vpop.xlane.xlu2 %1119 }
 0x56a   : > { %2364 = vrcp.f32 %v1120_v56  ;;  %v1263_v34 = vadd.f32 %v2361_v62, %v1262_v4  ;;  %v1285_v23 = vand.u32 2147483648, %v1120_v56  ;;  %v1283_v25 = vand.u32 2147483647, %v1120_v56 }
 0x56b   : > { %v2363_v5 = vpop.eup %2362  ;;  %vm1279_vm3 = vweird.f32 %v1120_v56 }
 0x56c   : > { %v1170_v7 = vmul.f32 %v2363_v5, %v1099_v3  ;;  %v1267_v13 = vsel %vm1266_vm11, %v2361_v62, %v1263_v34  ;;  %vm1175_vm1 = vweird.f32 %v2363_v5  ;;  %v1286_v35 = vor.u32 1.1754944e-38, %v1285_v23 }
 0x56d   : > { %v1272_v22 = vsel %vm1269_vm12, %v1271_v60, %v1267_v13  ;;  %vm2827_vm6 = vmor %vm1174_vm4, %vm1175_vm1  ;;  %vm1284_vm7 = vcmp.eq.f32.partialorder %v1283_v25, 8.507059e+37 }
 0x56e   : > { %v1171_v10 = vsub.f32 1.0, %v1170_v7  ;;  %v1273_v29 = vmul.f32 %v2778_v42, %v1272_v22 }
 0x570   : > { %v2365_v12 = vpop.eup %2364  ;;  %v1172_v18 = vmul.f32 %v2363_v5, %v1171_v10  ;;  %v1313_v44 = vpack.c.bf16 %v1273_v29, %v1273_v29 }
 0x571   : > { %v1275_v14 = vmul.f32 %v2365_v12, %v1120_v56  ;;  %v1102_v16 = vpop.xlane.xlu2 %1101  ;;  %vm1280_vm0 = vweird.f32 %v2365_v12 }
 0x572   : > { %2366 = vrcp.f32 %v1102_v16  ;;  %v1173_v26 = vadd.f32 %v2363_v5, %v1172_v18  ;;  %vm1281_vm5 = vmor %vm1279_vm3, %vm1280_vm0  ;;  %v1193_v47 = vand.u32 2147483647, %v1102_v16  ;;  %v1195_v49 = vand.u32 2147483648, %v1102_v16 }
 0x573   : > { %v1276_v19 = vsub.f32 1.0, %v1275_v14  ;;  %v1428_v54 = vunpack.c.l.b16 %v1313_v44  ;;  %vm1189_vm10 = vweird.f32 %v1102_v16 }
 0x574   : > { %v1177_v42 = vsel %vm2827_vm6, %v2363_v5, %v1173_v26  ;;  %v1196_v59 = vor.u32 1.1754944e-38, %v1195_v49  ;;  %vm1194_vm12 = vcmp.eq.f32.partialorder %v1193_v47, 8.507059e+37 }
 0x575   : > { %v1277_v24 = vmul.f32 %v2365_v12, %v1276_v19  ;;  %v1182_v50 = vsel %vm1179_vm8, %v1181_v41, %v1177_v42 }
 0x576   : > { %v1183_v61 = vmul.f32 %v2782_v48, %v1182_v50 }
 0x577   : > { %v1278_v30 = vadd.f32 %v2365_v12, %v1277_v24 }
 0x578   : > { %v2367_v32 = vpop.eup %2366  ;;  %v1307_v10 = vpack.c.bf16 %v1183_v61, %v1183_v61 }
 0x579   : > { %v1282_v37 = vsel %vm1281_vm5, %v2365_v12, %v1278_v30  ;;  %v1185_v38 = vmul.f32 %v2367_v32, %v1102_v16  ;;  %v1111_v39 = vpop.xlane.xlu2 %1110  ;;  %v2831_v40 = vpop.xlane.xlu1 %1107  ;;  %vm1190_vm9 = vweird.f32 %v2367_v32 }
 0x57a   : > { %v1287_v43 = vsel %vm1284_vm7, %v1286_v35, %v1282_v37  ;;  %2368 = vrcp.f32 %v1111_v39  ;;  %vm1191_vm11 = vmor %vm1189_vm10, %vm1190_vm9  ;;  %v1238_v34 = vand.u32 2147483647, %v1111_v39  ;;  %v1240_v9 = vand.u32 2147483648, %v1111_v39 }
 0x57b   : > { %v1288_v45 = vmul.f32 %v2786_v53, %v1287_v43  ;;  %v1186_v46 = vsub.f32 1.0, %v1185_v38  ;;  %2370 = vrcp.f32 %v2831_v40  ;;  %v1225_v12 = vand.u32 2147483648, %v2831_v40 }
 0x57c   : > { %v1223_v16 = vand.u32 2147483647, %v2831_v40  ;;  %vm1234_vm3 = vweird.f32 %v1111_v39  ;;  %vm1239_vm4 = vcmp.eq.f32.partialorder %v1238_v34, 8.507059e+37  ;;  %v1241_v19 = vor.u32 1.1754944e-38, %v1240_v9 }
 0x57d   : > { %v1314_v51 = vpack.c.bf16 %v1288_v45, %v1288_v45  ;;  %v1187_v52 = vmul.f32 %v2367_v32, %v1186_v46  ;;  %vm1219_vm6 = vweird.f32 %v2831_v40  ;;  %v1226_v25 = vor.u32 1.1754944e-38, %v1225_v12 }
 0x57e   : > { %v1358_v27 = vunpack.c.l.b16 %v1307_v10  ;;  %vm1224_vm8 = vcmp.eq.f32.partialorder %v1223_v16, 8.507059e+37 }
 0x57f   : > { %v1429_v55 = vunpack.c.l.b16 %v1314_v51  ;;  %v1188_v57 = vadd.f32 %v2367_v32, %v1187_v52 }
 0x580   : > { %v2369_v58 = vpop.eup %2368 }
 0x581   : > { %v2371_v53 = vpop.eup %2370  ;;  %v1192_v62 = vsel %vm1191_vm11, %v2367_v32, %v1188_v57  ;;  %v1230_v2 = vmul.f32 %v2369_v58, %v1111_v39  ;;  %v2838_v3 = vpop.xlane.xlu2 %1122  ;;  %v1431_v4 = vpack.c.b16 %v1429_v55, %v1428_v54  ;;  %vm1235_vm0 = vweird.f32 %v2369_v58 }
 0x582   : > { %v2840_v31 = vpop.xlane.xlu1 %1095  ;;  %v1197_v56 = vsel %vm1194_vm12, %v1196_v59, %v1192_v62  ;;  %v1215_v5 = vmul.f32 %v2371_v53, %v2831_v40  ;;  %2372 = vrcp.f32 %v2838_v3  ;;  %vm1220_vm1 = vweird.f32 %v2371_v53  ;;  %vm1236_vm5 = vmor %vm1234_vm3, %vm1235_vm0 }
 0x583   : > { %v1231_v7 = vsub.f32 1.0, %v1230_v2  ;;  %2166 = vmatmul.msk.bf16.vlgmr.msra.gmra.mxu2 %vm1015_vm14, %v1431_v4  ;;  %2374 = vrcp.f32 %v2840_v31  ;;  %v1198_v13 = vmul.f32 %v2791_v63, %v1197_v56  ;;  %vm1221_vm7 = vmor %vm1219_vm6, %vm1220_vm1  ;;  %v1300_v40 = vand.u32 2147483648, %v2838_v3 }
 0x584   : > { %v1216_v48 = vsub.f32 1.0, %v1215_v5  ;;  %v1163_v42 = vand.u32 2147483647, %v2840_v31  ;;  %v1165_v47 = vand.u32 2147483648, %v2840_v31  ;;  %vm1294_vm11 = vweird.f32 %v2838_v3 }
 0x585   : > { %v1232_v11 = vmul.f32 %v2369_v58, %v1231_v7  ;;  %v1308_v23 = vpack.c.bf16 %v1198_v13, %v1198_v13  ;;  %vm1159_vm12 = vweird.f32 %v2840_v31  ;;  %v1301_v57 = vor.u32 1.1754944e-38, %v1300_v40 }
 0x586   : > { %v1217_v14 = vmul.f32 %v2371_v53, %v1216_v48  ;;  %vm1164_vm1 = vcmp.eq.f32.partialorder %v1163_v42, 8.507059e+37  ;;  %v1166_v61 = vor.u32 1.1754944e-38, %v1165_v47  ;;  %v1475_v42 = vld [vmem:[%s2664_s29 + $0xc] sm:$0xf] }
 0x587   : > { %v1233_v60 = vadd.f32 %v2369_v58, %v1232_v11  ;;  %v1359_v41 = vunpack.c.l.b16 %v1308_v23 }
 0x588   : > { %v2373_v18 = vpop.eup %2372  ;;  %v1218_v22 = vadd.f32 %v2371_v53, %v1217_v14 }
 0x589   : > { %v1237_v24 = vsel %vm1236_vm5, %v2369_v58, %v1233_v60  ;;  %v1290_v26 = vmul.f32 %v2373_v18, %v2838_v3  ;;  %v2851_v63 = vpop.xlane.xlu2 %1113  ;;  %v2375_v29 = vpop.eup %2374  ;;  %vm1295_vm9 = vweird.f32 %v2373_v18  ;;  %v1361_v54 = vpack.c.b16 %v1359_v41, %v1358_v27  ;;  %v1473_v41 = vld [vmem:[%s2664_s29 + $0x4] sm:$0xf] }
 0x58a   : > { %v1242_v30 = vsel %vm1239_vm4, %v1241_v19, %v1237_v24  ;;  %v1222_v32 = vsel %vm1221_vm7, %v2371_v53, %v1218_v22  ;;  %2376 = vrcp.f32 %v2851_v63  ;;  %v2854_v33 = vpop.xlane.xlu1 %1104  ;;  %v1155_v38 = vmul.f32 %v2375_v29, %v2840_v31  ;;  %vm2866_vm0 = vmor %vm1294_vm11, %vm1295_vm9 }
 0x58b   : > { %v1243_v35 = vmul.f32 %v2796_v6, %v1242_v30  ;;  %v1227_v36 = vsel %vm1224_vm8, %v1226_v25, %v1222_v32  ;;  %v1291_v37 = vsub.f32 1.0, %v1290_v26  ;;  %2378 = vrcp.f32 %v2854_v33  ;;  %2162 = vmatmul.msk.bf16.vlgmr.msrb.gmra.mxu1 %vm1015_vm14, %v1361_v54 }
 0x58c   : > { %v1228_v39 = vmul.f32 %v2799_v8, %v1227_v36  ;;  %v1156_v45 = vsub.f32 1.0, %v1155_v38  ;;  %v1298_v6 = vand.u32 2147483647, %v2838_v3  ;;  %vm1160_vm10 = vweird.f32 %v2375_v29 }
 0x58d   : > { %v1311_v43 = vpack.c.bf16 %v1243_v35, %v1243_v35  ;;  %v1292_v44 = vmul.f32 %v2373_v18, %v1291_v37  ;;  %vm1161_vm3 = vmor %vm1159_vm12, %vm1160_vm10  ;;  %v1255_v31 = vand.u32 2147483648, %v2851_v63  ;;  %v1253_v48 = vand.u32 2147483647, %v2851_v63 }
 0x58e   : > { %v1310_v46 = vpack.c.bf16 %v1228_v39, %v1228_v39  ;;  %v1157_v51 = vmul.f32 %v2375_v29, %v1156_v45  ;;  %vm1299_vm4 = vcmp.eq.f32.partialorder %v1298_v6, 8.507059e+37  ;;  %vm1249_vm6 = vweird.f32 %v2851_v63 }
 0x58f   : > { %v1394_v49 = vunpack.c.l.b16 %v1311_v43  ;;  %v1293_v50 = vadd.f32 %v2373_v18, %v1292_v44  ;;  %v1256_v14 = vor.u32 1.1754944e-38, %v1255_v31  ;;  %v1210_v16 = vand.u32 2147483648, %v2854_v33  ;;  %v1474_v43 = vld [vmem:[%s2664_s29 + $0x8] sm:$0xf] }
 0x590   : > { %v2377_v8 = vpop.eup %2376  ;;  %v1393_v52 = vunpack.c.l.b16 %v1310_v46  ;;  %v1158_v58 = vadd.f32 %v2375_v29, %v1157_v51  ;;  %vm1254_vm9 = vcmp.eq.f32.partialorder %v1253_v48, 8.507059e+37  ;;  %vm1204_vm10 = vweird.f32 %v2854_v33 }
 0x591   : > { %v1245_v59 = vmul.f32 %v2377_v8, %v2851_v63  ;;  %v1297_v62 = vsel %vm2866_vm0, %v2373_v18, %v1293_v50  ;;  %v2379_v2 = vpop.eup %2378  ;;  %vm1250_vm5 = vweird.f32 %v2377_v8  ;;  %v1211_v26 = vor.u32 1.1754944e-38, %v1210_v16 }
 0x592   : > { %v1396_v53 = vpack.c.b16 %v1394_v49, %v1393_v52  ;;  %v1162_v4 = vsel %vm1161_vm3, %v2375_v29, %v1158_v58  ;;  %v1302_v56 = vsel %vm1299_vm4, %v1301_v57, %v1297_v62  ;;  %v1200_v5 = vmul.f32 %v2379_v2, %v2854_v33  ;;  %vm1251_vm7 = vmor %vm1249_vm6, %vm1250_vm5 }
 0x593   : > { %v1246_v3 = vsub.f32 1.0, %v1245_v59  ;;  %v1167_v7 = vsel %vm1164_vm1, %v1166_v61, %v1162_v4  ;;  %v1303_v34 = vmul.f32 %v2806_v15, %v1302_v56  ;;  %vm1205_vm8 = vweird.f32 %v2379_v2 }
 0x594   : > { %2164 = vmatmul.msk.bf16.vlgmr.msra.gmra.mxu0 %vm1015_vm14, %v1396_v53  ;;  %v1168_v10 = vmul.f32 %v2809_v17, %v1167_v7  ;;  %v1201_v11 = vsub.f32 1.0, %v1200_v5  ;;  %v1208_v15 = vand.u32 2147483647, %v2854_v33  ;;  %vm1206_vm11 = vmor %vm1204_vm10, %vm1205_vm8  ;;  %v1596_v44 = vsel %vm876_vm13, %v1475_v42, 0 }
 0x595   : > { %v1247_v9 = vmul.f32 %v2377_v8, %v1246_v3  ;;  %v1315_v12 = vpack.c.bf16 %v1303_v34, %v1303_v34  ;;  %v1561_v45 = vsel %vm876_vm13, %v1474_v43, 0  ;;  %1605 = vmatpush.bf16.msrb.mxu2 %v1596_v44 }
 0x596   : > { %v1306_v60 = vpack.c.bf16 %v1168_v10, %v1168_v10  ;;  %v1202_v18 = vmul.f32 %v2379_v2, %v1201_v11  ;;  %vm1209_vm12 = vcmp.eq.f32.partialorder %v1208_v15, 8.507059e+37  ;;  %1570 = vmatpush.bf16.msrb.mxu0 %v1561_v45 }
 0x597   : > { %v1248_v13 = vadd.f32 %v2377_v8, %v1247_v9  ;;  %v1430_v19 = vunpack.c.l.b16 %v1315_v12 }
 0x598   : > { %v1325_v22 = vunpack.c.l.b16 %v1306_v60  ;;  %v1203_v24 = vadd.f32 %v2379_v2, %v1202_v18 }
 0x599   : > { %v1252_v23 = vsel %vm1251_vm7, %v2377_v8, %v1248_v13  ;;  %v1432_v17 = vpack.c.b16 %v1430_v19, %v1430_v19 }
 0x59a   : > { %v1257_v25 = vsel %vm1254_vm9, %v1256_v14, %v1252_v23  ;;  %v1327_v63 = vpack.c.b16 %v1325_v22, %v1325_v22  ;;  %v1207_v29 = vsel %vm1206_vm11, %v2379_v2, %v1203_v24 }
 0x59b   : > { %v1258_v27 = vmul.f32 %v2815_v20, %v1257_v25  ;;  %2167 = vmatmul.msk.bf16.gmra.mxu2 %vm1015_vm14, %v1432_v17  ;;  %v1212_v30 = vsel %vm1209_vm12, %v1211_v26, %v1207_v29  ;;  %v1472_v20 = vld [vmem:[%s2664_s29] sm:$0xf] }
 0x59c   : > { %2161 = vmatmul.msk.bf16.gmra.mxu3 %vm1015_vm14, %v1327_v63  ;;  %v1213_v33 = vmul.f32 %v2817_v21, %v1212_v30  ;;  %v1491_v40 = vsel %vm876_vm13, %v1472_v20, 0  ;;  %v1526_v21 = vsel %vm876_vm13, %v1473_v41, 0 }
 0x59d   : > { %v1312_v32 = vpack.c.bf16 %v1258_v27, %v1258_v27  ;;  %1500 = vmatpush.bf16.msra.mxu3 %v1491_v40  ;;  %1535 = vmatpush.bf16.msra.mxu1 %v1526_v21 }
 0x59e   : > { %v1309_v36 = vpack.c.bf16 %v1213_v33, %v1213_v33 }
 0x59f   : > { %v1395_v35 = vunpack.c.l.b16 %v1312_v32 }
 0x5a0   : > { %v1360_v38 = vunpack.c.l.b16 %v1309_v36 }
 0x5a1   : > { %v1397_v37 = vpack.c.b16 %v1395_v35, %v1395_v35 }
 0x5a2   : > { %v1362_v39 = vpack.c.b16 %v1360_v38, %v1360_v38 }
 0x5a4   : > { %2165 = vmatmul.msk.bf16.gmra.mxu0 %vm1015_vm14, %v1397_v37  ;;  %2163 = vmatmul.msk.bf16.gmra.mxu1 %vm1015_vm14, %v1362_v39 }
 0x5e1   : > { %v1346_v46 = vpop.f32.mrf.mxu3 }
 0x5e2   : > { %v1460_v6 = vpack.c.bf16 %v1346_v46, %v1346_v46  ;;  %v1640_v46 = vperm.slane %v2682_v0, 4 }
 0x5e4   : > { %v1479_v50 = vunpack.c.l.b16 %v1460_v6 }
 0x5e9   : > { %v1348_v47 = vpop.f32.mrf.mxu3 }
 0x5ea   : > { %v1461_v49 = vpack.c.bf16 %v1348_v47, %v1348_v47  ;;  %v2392_v47 = vld [vmem:[#allocation2] sm:$0xff] }
 0x5ec   : > { %v1480_v51 = vunpack.c.l.b16 %v1461_v49 }
 0x5ee   : > { %v1482_v8 = vpack.c.b16 %v1480_v51, %v1479_v50 }
 0x5f0   : > { %2168 = vmatmul.msk.bf16.vlgmr.msra.gmra.mxu3 %vm869_vm15, %v1482_v8 }
 0x606   : > { %v1451_v52 = vpop.f32.mrf.mxu2 }
 0x607   : > { %v1469_v54 = vpack.c.bf16 %v1451_v52, %v1451_v52 }
 0x608   : > { %v1381_v57 = vpop.f32.mrf.mxu1 }
 0x609   : > { %v1584_v59 = vunpack.c.l.b16 %v1469_v54  ;;  %v1463_v2 = vpack.c.bf16 %v1381_v57, %v1381_v57 }
 0x60b   : > { %v1514_v5 = vunpack.c.l.b16 %v1463_v2 }
 0x60e   : > { %v1453_v55 = vpop.f32.mrf.mxu2 }
 0x60f   : > { %v1470_v58 = vpack.c.bf16 %v1453_v55, %v1453_v55 }
 0x610   : > { %v1383_v3 = vpop.f32.mrf.mxu1 }
 0x611   : > { %v1585_v61 = vunpack.c.l.b16 %v1470_v58  ;;  %v1416_v53 = vpop.f32.mrf.mxu0  ;;  %v1464_v31 = vpack.c.bf16 %v1383_v3, %v1383_v3  ;;  %v2393_v3 = vld [vmem:[#allocation2 + $0x8] sm:$0xff] }
 0x612   : > { %v1466_v4 = vpack.c.bf16 %v1416_v53, %v1416_v53 }
 0x613   : > { %v1587_v62 = vpack.c.b16 %v1585_v61, %v1584_v59  ;;  %v1515_v7 = vunpack.c.l.b16 %v1464_v31 }
 0x614   : > { %v1549_v48 = vunpack.c.l.b16 %v1466_v4 }
 0x615   : > { %2174 = vmatmul.msk.bf16.vlgmr.msrb.gmra.mxu2 %vm869_vm15, %v1587_v62  ;;  %v1517_v9 = vpack.c.b16 %v1515_v7, %v1514_v5 }
 0x617   : > { %2170 = vmatmul.msk.bf16.vlgmr.msra.gmra.mxu1 %vm869_vm15, %v1517_v9 }
 0x619   : > { %v1418_v56 = vpop.f32.mrf.mxu0 }
 0x61a   : > { %v1467_v34 = vpack.c.bf16 %v1418_v56, %v1418_v56 }
 0x61c   : > { %v1550_v10 = vunpack.c.l.b16 %v1467_v34 }
 0x61e   : > { %v1552_v11 = vpack.c.b16 %v1550_v10, %v1549_v48  ;;  %v1456_v12 = vpop.f32.mrf.mxu2 }
 0x61f   : > { %v1351_v13 = vpop.f32.mrf.mxu3  ;;  %v1471_v14 = vpack.c.bf16 %v1456_v12, %v1456_v12 }
 0x620   : > { %2172 = vmatmul.msk.bf16.vlgmr.msrb.gmra.mxu0 %vm869_vm15, %v1552_v11  ;;  %v1462_v16 = vpack.c.bf16 %v1351_v13, %v1351_v13 }
 0x621   : > { %v1421_v60 = vpop.f32.mrf.mxu0  ;;  %v1586_v18 = vunpack.c.l.b16 %v1471_v14  ;;  %v1386_v19 = vpop.f32.mrf.mxu1 }
 0x622   : > { %v1481_v15 = vunpack.c.l.b16 %v1462_v16  ;;  %v1465_v23 = vpack.c.bf16 %v1386_v19, %v1386_v19  ;;  %v1468_v25 = vpack.c.bf16 %v1421_v60, %v1421_v60  ;;  %v2394_v60 = vld [vmem:[#allocation2 + $0x10] sm:$0xff] }
 0x623   : > { %v1588_v22 = vpack.c.b16 %v1586_v18, %v1586_v18 }
 0x624   : > { %v1483_v24 = vpack.c.b16 %v1481_v15, %v1481_v15  ;;  %v1516_v17 = vunpack.c.l.b16 %v1465_v23  ;;  %v1551_v30 = vunpack.c.l.b16 %v1468_v25 }
 0x625   : > { %2175 = vmatmul.msk.bf16.gmra.mxu2 %vm869_vm15, %v1588_v22 }
 0x626   : > { %2169 = vmatmul.msk.bf16.gmra.mxu3 %vm869_vm15, %v1483_v24  ;;  %v1458_v26 = vpop.f32.mrf.mxu2  ;;  %v1518_v29 = vpack.c.b16 %v1516_v17, %v1516_v17  ;;  %v1553_v33 = vpack.c.b16 %v1551_v30, %v1551_v30 }
 0x627   : > { %v1353_v63 = vpop.f32.mrf.mxu3 }
 0x628   : > { %2171 = vmatmul.msk.bf16.gmra.mxu1 %vm869_vm15, %v1518_v29 }
 0x629   : > { %v1423_v27 = vpop.f32.mrf.mxu0  ;;  %v1388_v32 = vpop.f32.mrf.mxu1 }
 0x630   : > { %2173 = vmatmul.msk.bf16.gmra.mxu0 %vm869_vm15, %v1553_v33 }
 0x673   : > { %v1502_v35 = vpop.f32.mrf.mxu3 }
 0x674   : > { %v1616_v38 = vsel %vm556_vm2, %v1502_v35, 0.0 }
 0x67b   : > { %v1504_v21 = vpop.f32.mrf.mxu3 }
 0x67c   : > { %v1623_v50 = vsel %vm556_vm2, %v1504_v21, 0.0 }
 0x694   : > { %v1537_v37 = vpop.f32.mrf.mxu1 }
 0x695   : > { %v1617_v39 = vsel %vm556_vm2, %v1537_v37, 0.0 }
 0x696   : > { %v1618_v20 = vadd.f32 %v1617_v39, %v1616_v38  ;;  %v2237_v39 = vld [vmem:[%s2669_s28 + $0x8] sm:$0xff] }
 0x697   : > { %1749 = vmatpush.bf16.msrb.mxu3 %v2237_v39 }
 0x698   : > { %v1607_v36 = vpop.f32.mrf.mxu2 }
 0x699   : > { %v1621_v43 = vsel %vm556_vm2, %v1607_v36, 0.0 }
 0x69c   : > { %v1539_v6 = vpop.f32.mrf.mxu1 }
 0x69d   : > { %v1572_v40 = vpop.f32.mrf.mxu0  ;;  %v1624_v51 = vsel %vm556_vm2, %v1539_v6, 0.0 }
 0x69e   : > { %v1619_v42 = vsel %vm556_vm2, %v1572_v40, 0.0  ;;  %v1625_v8 = vadd.f32 %v1624_v51, %v1623_v50 }
 0x69f   : > { %v1620_v41 = vadd.f32 %v1619_v42, %v1618_v20 }
 0x6a0   : > { %v1609_v44 = vpop.f32.mrf.mxu2 }
 0x6a1   : > { %v1622_v45 = vadd.f32 %v1621_v43, %v1620_v41  ;;  %v1628_v59 = vsel %vm556_vm2, %v1609_v44, 0.0  ;;  %v2236_v41 = vld [vmem:[%s2669_s28] sm:$0xff] }
 0x6a2   : > { %1750 = vmatpush.bf16.msrb.mxu3 %v2236_v41 }
 0x6a3   : > { %v1637_v49 = vadd.f32 %v2392_v47, %v1622_v45 }
 0x6a5   : > { %v1574_v52 = vpop.f32.mrf.mxu0  ;;  %v2913_v54 = vadd.f32 %v1640_v46, %v1637_v49  ;;  %v1542_v2 = vpop.f32.mrf.mxu1 }
 0x6a6   : > { %v1626_v55 = vsel %vm556_vm2, %v1574_v52, 0.0  ;;  %v1631_v56 = vsel %vm556_vm2, %v1542_v2, 0.0  ;;  %v1710_v2 = vperm.slane %v2682_v0, 5 }
 0x6a7   : > { %v1627_v57 = vadd.f32 %v1626_v55, %v1625_v8  ;;  %v1644_v58 = vsel %vm556_vm2, %v2913_v54, 0.0 }
 0x6a8   : > { %1645 = vadd.xlane.f32.xlu0 %v1644_v58  ;;  %v1612_v53 = vpop.f32.mrf.mxu2 }
 0x6a9   : > { %v1629_v61 = vadd.f32 %v1628_v59, %v1627_v57  ;;  %v1507_v62 = vpop.f32.mrf.mxu3  ;;  %v1635_v11 = vsel %vm556_vm2, %v1612_v53, 0.0 }
 0x6aa   : > { %v1630_v4 = vsel %vm556_vm2, %v1507_v62, 0.0 }
 0x6ab   : > { %v1638_v31 = vadd.f32 %v2393_v3, %v1629_v61  ;;  %v1632_v5 = vadd.f32 %v1631_v56, %v1630_v4 }
 0x6ad   : > { %v1577_v7 = vpop.f32.mrf.mxu0  ;;  %v2921_v34 = vadd.f32 %v1640_v46, %v1638_v31  ;;  %v1544_v16 = vpop.f32.mrf.mxu1 }
 0x6ae   : > { %v1633_v9 = vsel %vm556_vm2, %v1577_v7, 0.0  ;;  %v1714_v7 = vperm.slane %v2682_v0, 6 }
 0x6af   : > { %v1634_v48 = vadd.f32 %v1633_v9, %v1632_v5  ;;  %v1647_v10 = vsel %vm556_vm2, %v2921_v34, 0.0 }
 0x6b0   : > { %1648 = vadd.xlane.f32.xlu1 %v1647_v10  ;;  %v1614_v13 = vpop.f32.mrf.mxu2 }
 0x6b1   : > { %v1636_v12 = vadd.f32 %v1635_v11, %v1634_v48  ;;  %v1509_v14 = vpop.f32.mrf.mxu3 }
 0x6b3   : > { %v1639_v18 = vadd.f32 %v2394_v60, %v1636_v12 }
 0x6b5   : > { %v1579_v15 = vpop.f32.mrf.mxu0  ;;  %v2927_v19 = vadd.f32 %v1640_v46, %v1639_v18 }
 0x6b7   : > { %v1650_v22 = vsel %vm556_vm2, %v2927_v19, 0.0 }
 0x6b8   : > { %1651 = vadd.xlane.f32.xlu2 %v1650_v22 }
 0x71b   : > { %v1646_v23 = vpop.xlane.xlu0 %1645 }
 0x71c   : > { %v1653_v24 = vmul.f32 %v1646_v23, %v2704_v28 }
 0x71e   : > { %v1656_v17 = vsub.f32 %v2913_v54, %v1653_v24 }
 0x720   : > { %v1659_v25 = vmul.f32 %v1656_v17, %v1656_v17 }
 0x722   : > { %v1662_v26 = vsel %vm556_vm2, %v1659_v25, 0.0  ;;  %v2244_v25 = vld [vmem:[%s2674_s22 + $0x30] sm:$0xff] }
 0x723   : > { %1663 = vadd.xlane.f32.xlu0 %v1662_v26  ;;  %v1649_v63 = vpop.xlane.xlu1 %1648  ;;  %v2243_v26 = vld [vmem:[%s2674_s22 + $0x28] sm:$0xff] }
 0x724   : > { %v1654_v27 = vmul.f32 %v1649_v63, %v2704_v28  ;;  %v2242_v63 = vld [vmem:[%s2674_s22 + $0x20] sm:$0xff] }
 0x726   : > { %v1657_v29 = vsub.f32 %v2921_v34, %v1654_v27  ;;  %v2241_v27 = vld [vmem:[%s2674_s22 + $0x18] sm:$0xff] }
 0x728   : > { %v1660_v30 = vmul.f32 %v1657_v29, %v1657_v29 }
 0x72a   : > { %v1665_v32 = vsel %vm556_vm2, %v1660_v30, 0.0  ;;  %v2240_v30 = vld [vmem:[%s2674_s22 + $0x10] sm:$0xff] }
 0x72b   : > { %1666 = vadd.xlane.f32.xlu1 %v1665_v32  ;;  %v1652_v33 = vpop.xlane.xlu2 %1651 }
 0x72c   : > { %v1655_v35 = vmul.f32 %v1652_v33, %v2704_v28  ;;  %v2239_v33 = vld [vmem:[%s2674_s22 + $0x8] sm:$0xff] }
 0x72e   : > { %v1658_v36 = vsub.f32 %v2927_v19, %v1655_v35 }
 0x730   : > { %v1661_v37 = vmul.f32 %v1658_v36, %v1658_v36 }
 0x732   : > { %v1668_v38 = vsel %vm556_vm2, %v1661_v37, 0.0  ;;  %v2238_v37 = vld [vmem:[%s2674_s22] sm:$0xff] }
 0x733   : > { %1669 = vadd.xlane.f32.xlu2 %v1668_v38 }
 0x796   : > { %v1664_v20 = vpop.xlane.xlu0 %1663 }
 0x797   : > { %v1671_v40 = vmul.f32 %v1664_v20, %v2704_v28 }
 0x799   : > { %v1674_v42 = vadd.f32 1e-05, %v1671_v40 }
 0x79b   : > { %2380 = vrsqrt.f32 %v1674_v42  ;;  %vm1683_vm14 = vweird.f32 %v1674_v42 }
 0x79e   : > { %v1667_v43 = vpop.xlane.xlu1 %1666 }
 0x79f   : > { %v1672_v44 = vmul.f32 %v1667_v43, %v2704_v28 }
 0x7a1   : > { %v2381_v21 = vpop.eup %2380  ;;  %v1675_v45 = vadd.f32 1e-05, %v1672_v44 }
 0x7a2   : > { %v1678_v46 = vmul.f32 %v2381_v21, %v1674_v42  ;;  %vm1684_vm13 = vweird.f32 %v2381_v21 }
 0x7a3   : > { %2382 = vrsqrt.f32 %v1675_v45  ;;  %vm1685_vm15 = vmor %vm1683_vm14, %vm1684_vm13  ;;  %vm1693_vm1 = vweird.f32 %v1675_v45 }
 0x7a4   : > { %v1679_v6 = vmul.f32 %v2381_v21, %v1678_v46 }
 0x7a6   : > { %v1680_v47 = vmul.f32 0.5, %v1679_v6  ;;  %v1670_v49 = vpop.xlane.xlu2 %1669 }
 0x7a7   : > { %v1673_v50 = vmul.f32 %v1670_v49, %v2704_v28 }
 0x7a8   : > { %v1681_v51 = vsub.f32 1.5, %v1680_v47 }
 0x7a9   : > { %v2383_v8 = vpop.eup %2382  ;;  %v1676_v52 = vadd.f32 1e-05, %v1673_v50 }
 0x7aa   : > { %v1682_v55 = vmul.f32 %v2381_v21, %v1681_v51  ;;  %v1688_v57 = vmul.f32 %v2383_v8, %v1675_v45  ;;  %vm1694_vm0 = vweird.f32 %v2383_v8 }
 0x7ab   : > { %2384 = vrsqrt.f32 %v1676_v52  ;;  %vm1695_vm3 = vmor %vm1693_vm1, %vm1694_vm0  ;;  %vm1703_vm5 = vweird.f32 %v1676_v52 }
 0x7ac   : > { %v1689_v58 = vmul.f32 %v2383_v8, %v1688_v57  ;;  %v1686_v59 = vsel %vm1685_vm15, %v2381_v21, %v1682_v55 }
 0x7ad   : > { %v1707_v3 = vmul.f32 %v1686_v59, %v1656_v17  ;;  %v2245_v17 = vld [vmem:[%s2674_s22 + $0x38] sm:$0xff] }
 0x7ae   : > { %v1690_v61 = vmul.f32 0.5, %v1689_v58  ;;  %1855 = vmatpush.bf16.msrb.mxu1 %v2245_v17 }
 0x7af   : > { %v1711_v9 = vmul.f32 %v1710_v2, %v1707_v3 }
 0x7b0   : > { %v1691_v53 = vsub.f32 1.5, %v1690_v61 }
 0x7b1   : > { %v2385_v62 = vpop.eup %2384  ;;  %v1715_v13 = vadd.f32 %v1714_v7, %v1711_v9  ;;  %v1806_v9 = vperm.slane %v2684_v1, 0 }
 0x7b2   : > { %v1692_v31 = vmul.f32 %v2383_v8, %v1691_v53  ;;  %v1698_v4 = vmul.f32 %v2385_v62, %v1676_v52  ;;  %vm1704_vm4 = vweird.f32 %v2385_v62  ;;  %1856 = vmatpush.bf16.msrb.mxu1 %v2244_v25 }
 0x7b3   : > { %vm1705_vm6 = vmor %vm1703_vm5, %vm1704_vm4 }
 0x7b4   : > { %v1696_v56 = vsel %vm1695_vm3, %v2383_v8, %v1692_v31  ;;  %v1699_v5 = vmul.f32 %v2385_v62, %v1698_v4 }
 0x7b5   : > { %v1708_v48 = vmul.f32 %v1696_v56, %v1657_v29  ;;  %v1724_v29 = vperm.slane %v2682_v0, 7 }
 0x7b6   : > { %v1700_v10 = vmul.f32 0.5, %v1699_v5  ;;  %1857 = vmatpush.bf16.msrb.mxu1 %v2243_v26 }
 0x7b7   : > { %v1712_v11 = vmul.f32 %v1710_v2, %v1708_v48 }
 0x7b8   : > { %v1701_v12 = vsub.f32 1.5, %v1700_v10 }
 0x7b9   : > { %v1716_v14 = vadd.f32 %v1714_v7, %v1712_v11 }
 0x7ba   : > { %v1702_v16 = vmul.f32 %v2385_v62, %v1701_v12  ;;  %1858 = vmatpush.bf16.msrb.mxu1 %v2242_v63 }
 0x7bb   : > { %v1718_v60 = vpack.c.bf16 %v1716_v14, %v1715_v13 }
 0x7bc   : > { %v1706_v18 = vsel %vm1705_vm6, %v2385_v62, %v1702_v16 }
 0x7bd   : > { %2184 = vmatmul.msk.bf16.vlgmr.msrb.gmra.mxu3 %vm556_vm2, %v1718_v60  ;;  %v1709_v15 = vmul.f32 %v1706_v18, %v1658_v36 }
 0x7be   : > { %1859 = vmatpush.bf16.msrb.mxu1 %v2241_v27 }
 0x7bf   : > { %v1713_v22 = vmul.f32 %v1710_v2, %v1709_v15 }
 0x7c1   : > { %v1717_v23 = vadd.f32 %v1714_v7, %v1713_v22 }
 0x7c2   : > { %1860 = vmatpush.bf16.msrb.mxu1 %v2240_v30 }
 0x7c3   : > { %v1719_v24 = vpack.c.bf16 %v1717_v23, %v1717_v23 }
 0x7c6   : > { %1861 = vmatpush.bf16.msrb.mxu1 %v2239_v33 }
 0x7ca   : > { %1862 = vmatpush.bf16.msrb.mxu1 %v2238_v37 }
 0x7cd   : > { %2185 = vmatmul.msk.bf16.gmra.mxu3 %vm556_vm2, %v1719_v24 }
 0x840   : > { %v1752_v32 = vpop.f32.mrf.mxu3 }
 0x841   : > { %v1753_v35 = vadd.f32 %v1752_v32, %v1724_v29 }
 0x843   : > { %v1761_v36 = vmul.f32 %v1753_v35, %v1753_v35 }
 0x845   : > { %v1764_v38 = vmul.f32 %v1761_v36, %v1753_v35 }
 0x847   : > { %v1767_v39 = vmul.f32 0.044715, %v1764_v38 }
 0x848   : > { %v1754_v20 = vpop.f32.mrf.mxu3 }
 0x849   : > { %v1770_v40 = vadd.f32 %v1767_v39, %v1753_v35  ;;  %v1755_v42 = vadd.f32 %v1754_v20, %v1724_v29 }
 0x84b   : > { %v1773_v41 = vmul.f32 0.7978846, %v1770_v40  ;;  %v1762_v43 = vmul.f32 %v1755_v42, %v1755_v42 }
 0x84d   : > { %v1765_v44 = vmul.f32 %v1762_v43, %v1755_v42  ;;  %2386 = vtanh.f32 %v1773_v41 }
 0x84f   : > { %v1768_v21 = vmul.f32 0.044715, %v1765_v44 }
 0x850   : > { %v1757_v0 = vpop.f32.mrf.mxu3 }
 0x851   : > { %v1771_v45 = vadd.f32 %v1768_v21, %v1755_v42  ;;  %v1758_v46 = vadd.f32 %v1757_v0, %v1724_v29 }
 0x853   : > { %v1774_v6 = vmul.f32 0.7978846, %v1771_v45  ;;  %v1763_v47 = vmul.f32 %v1758_v46, %v1758_v46  ;;  %v2387_v49 = vpop.eup %2386 }
 0x854   : > { %v1779_v8 = vadd.f32 1.0, %v2387_v49 }
 0x855   : > { %2388 = vtanh.f32 %v1774_v6  ;;  %v1766_v50 = vmul.f32 %v1763_v47, %v1758_v46 }
 0x856   : > { %v1782_v59 = vmul.f32 0.5, %v1779_v8 }
 0x857   : > { %v1769_v51 = vmul.f32 0.044715, %v1766_v50 }
 0x858   : > { %v1759_v52 = vpop.f32.mrf.mxu3  ;;  %v1785_v62 = vmul.f32 %v1782_v59, %v1753_v35 }
 0x859   : > { %v1772_v55 = vadd.f32 %v1769_v51, %v1758_v46 }
 0x85b   : > { %v2389_v57 = vpop.eup %2388  ;;  %v1775_v58 = vmul.f32 0.7978846, %v1772_v55 }
 0x85c   : > { %v1780_v61 = vadd.f32 1.0, %v2389_v57 }
 0x85d   : > { %2390 = vtanh.f32 %v1775_v58 }
 0x85e   : > { %v1783_v53 = vmul.f32 0.5, %v1780_v61 }
 0x860   : > { %v1786_v2 = vmul.f32 %v1783_v53, %v1755_v42 }
 0x862   : > { %v1788_v3 = vpack.c.bf16 %v1786_v2, %v1785_v62 }
 0x863   : > { %v2391_v31 = vpop.eup %2390 }
 0x864   : > { %1863 = vmatmul.bf16.vlgmr.msrb.gmra.mxu1 %v1788_v3  ;;  %v1781_v4 = vadd.f32 1.0, %v2391_v31 }
 0x866   : > { %v1784_v56 = vmul.f32 0.5, %v1781_v4 }
 0x868   : > { %v1787_v5 = vmul.f32 %v1784_v56, %v1758_v46 }
 0x86a   : > { %v1789_v7 = vpack.c.bf16 %v1787_v5, %v1787_v5 }
 0x874   : > { %1868 = vmatmul.bf16.gmra.mxu1 %v1789_v7 }
 0x8e1   : > { %v1864_v48 = vpop.f32.mrf.mxu1 }
 0x8e2   : > { %v1865_v10 = vadd.f32 %v1864_v48, %v1806_v9 }
 0x8e4   : > { %v1873_v11 = vadd.f32 %v1865_v10, %v2913_v54 }
 0x8e6   : > { %1876 = vst.msk [vmem:[#allocation2] sm:$0xff] %vm556_vm2, %v1873_v11 }
 0x8e9   : > { %v1866_v12 = vpop.f32.mrf.mxu1 }
 0x8ea   : > { %v1867_v13 = vadd.f32 %v1866_v12, %v1806_v9 }
 0x8ec   : > { %v1874_v14 = vadd.f32 %v1867_v13, %v2921_v34 }
 0x8ee   : > { %1877 = vst.msk [vmem:[#allocation2 + $0x8] sm:$0xff] %vm556_vm2, %v1874_v14 }
 0x8f1   : > { %v1869_v16 = vpop.f32.mrf.mxu1 }
 0x8f2   : > { %v1870_v60 = vadd.f32 %v1869_v16, %v1806_v9 }
 0x8f4   : > { %v1875_v18 = vadd.f32 %v1870_v60, %v2927_v19 }
 0x8f5   : > { %1882 = sbr.rel (%p2218_p2) target bundleno = 2575 (0xa0f), region = 64 }
 0x8f6   : > { %1878 = vst.msk [vmem:[#allocation2 + $0x10] sm:$0xff] %vm556_vm2, %v1875_v18 }
 0x8f9   : > { %v1871_v15 = vpop.f32.mrf.mxu1 }
 0x8fa   : > { %v1885_v1 = vsel %vm556_vm2, %v1874_v14, 0.0  ;;  %v1888_v54 = vsel %vm556_vm2, %v1875_v18, 0.0  ;;  %v2395_v44 = vld [vmem:[%s3038_s9] ss:$0 sm:$0xff]  ;;  %v2396_v45 = vld [vmem:[%s3038_s9 + $0x1] ss:$0 sm:$0xff] }
 0x8fb   : > { %1886 = vadd.xlane.f32.xlu0 %v1885_v1 }
 0x903   : > { %1889 = vadd.xlane.f32.xlu0 %v1888_v54 }
 0x96e   : > { %v1887_v22 = vpop.xlane.xlu0 %1886 }
 0x96f   : > { %v1891_v34 = vmul.f32 %v1887_v22, %v2704_v28 }
 0x971   : > { %v1893_v23 = vsub.f32 %v1874_v14, %v1891_v34 }
 0x973   : > { %v1895_v24 = vmul.f32 %v1893_v23, %v1893_v23 }
 0x975   : > { %v1897_v17 = vsel %vm556_vm2, %v1895_v24, 0.0 }
 0x976   : > { %1898 = vadd.xlane.f32.xlu1 %v1897_v17  ;;  %v1890_v19 = vpop.xlane.xlu0 %1889 }
 0x977   : > { %v1892_v25 = vmul.f32 %v1890_v19, %v2704_v28 }
 0x979   : > { %v1894_v26 = vsub.f32 %v1875_v18, %v1892_v25 }
 0x97b   : > { %v1896_v63 = vmul.f32 %v1894_v26, %v1894_v26 }
 0x97d   : > { %v1900_v27 = vsel %vm556_vm2, %v1896_v63, 0.0 }
 0x97e   : > { %1901 = vadd.xlane.f32.xlu1 %v1900_v27 }
 0x9e9   : > { %v1899_v29 = vpop.xlane.xlu1 %1898 }
 0x9ea   : > { %v1903_v30 = vmul.f32 %v1899_v29, %v2704_v28 }
 0x9ec   : > { %v1905_v32 = vadd.f32 1e-05, %v1903_v30 }
 0x9ee   : > { %2397 = vrsqrt.f32 %v1905_v32  ;;  %vm1913_vm8 = vweird.f32 %v1905_v32 }
 0x9f1   : > { %v1902_v33 = vpop.xlane.xlu1 %1901 }
 0x9f2   : > { %v1904_v35 = vmul.f32 %v1902_v33, %v2704_v28 }
 0x9f4   : > { %v2398_v36 = vpop.eup %2397  ;;  %v1906_v37 = vadd.f32 1e-05, %v1904_v35 }
 0x9f5   : > { %v1908_v38 = vmul.f32 %v2398_v36, %v1905_v32  ;;  %vm1914_vm7 = vweird.f32 %v2398_v36 }
 0x9f6   : > { %2399 = vrsqrt.f32 %v1906_v37  ;;  %vm1915_vm9 = vmor %vm1913_vm8, %vm1914_vm7  ;;  %vm1923_vm11 = vweird.f32 %v1906_v37 }
 0x9f7   : > { %v1909_v39 = vmul.f32 %v2398_v36, %v1908_v38 }
 0x9f9   : > { %v1910_v20 = vmul.f32 0.5, %v1909_v39 }
 0x9fb   : > { %v1911_v40 = vsub.f32 1.5, %v1910_v20 }
 0x9fc   : > { %v2400_v42 = vpop.eup %2399 }
 0x9fd   : > { %v1912_v41 = vmul.f32 %v2398_v36, %v1911_v40  ;;  %v1918_v43 = vmul.f32 %v2400_v42, %v1906_v37  ;;  %vm1924_vm10 = vweird.f32 %v2400_v42 }
 0x9fe   : > { %vm1925_vm12 = vmor %vm1923_vm11, %vm1924_vm10 }
 0x9ff   : > { %v1916_v21 = vsel %vm1915_vm9, %v2398_v36, %v1912_v41  ;;  %v1919_v28 = vmul.f32 %v2400_v42, %v1918_v43 }
 0xa00   : > { %v1927_v0 = vmul.f32 %v1916_v21, %v1893_v23 }
 0xa01   : > { %v1920_v46 = vmul.f32 0.5, %v1919_v28 }
 0xa02   : > { %v1930_v6 = vmul.f32 %v2395_v44, %v1927_v0 }
 0xa03   : > { %v1921_v47 = vsub.f32 1.5, %v1920_v46 }
 0xa04   : > { %v1933_v49 = vadd.f32 %v2396_v45, %v1930_v6 }
 0xa05   : > { %v1922_v50 = vmul.f32 %v2400_v42, %v1921_v47 }
 0xa06   : > { %1935 = vst.msk [vmem:[%s2686_s10] sm:$0xff] %vm556_vm2, %v1933_v49 }
 0xa07   : > { %v1926_v51 = vsel %vm1925_vm12, %v2400_v42, %v1922_v50 }
 0xa08   : > { %v1928_v8 = vmul.f32 %v1926_v51, %v1894_v26 }
 0xa0a   : > { %v1931_v52 = vmul.f32 %v2395_v44, %v1928_v8 }
 0xa0c   : > { %v1934_v55 = vadd.f32 %v2396_v45, %v1931_v52 }
 0xa0e   : > { %1936 = vst.msk [vmem:[%s2686_s10 + $0x8] sm:$0xff] %vm556_vm2, %v1934_v55 }
 0xa0f PF: > { %s3077_s27 = sld [smem:[#allocation10_spill]]  ;;  %s2246_s29 = sshll.u32 %s2497_s21, 4 }
 0xa10   : > { %s3079_s16 = sld [smem:[#allocation23_spill]]  ;;  %s1950_s25 = sshll.u32 %s2686_s10, 4  ;;  %s1951_s25 = int_to_ptr.vmem [resolvable:$true] %s1950_s25 }
 0xa15   : > { %s3080_s11 = sand.u32 1, %s3077_s27  }
 0xa16   : > { %s1949_s24 = scalar_lea.hbm %s3079_s16, %s2246_s29  ;;  %s1938_s22 = scalar_lea.sflag [#allocation6], %s3080_s11 }
 0xa17   : > { %s1952_s30 = sshll.u32 %s1949_s24, 4  ;;  %s2433_s21 = scalar_lea.hbm %s3079_s16, 32  ;;  %s1953_s30 = int_to_ptr.hbm [resolvable:$true] %s1952_s30 }
 0xa18   : > { %s2427_s0 = sshra.s32 %s1953_s30, 4  ;;  %s2428_s0 = int_to_ptr.hbm [resolvable:$true] %s2427_s0 }
 0xa19   : > { %s2429_s19 = scalar_lea.hbm %s2428_s0, 16  ;;  %p2434_p7 = scmp.lt.s32.totalorder %s2428_s0, %s3079_s16 }
 0xa1a   : > { %p2430_p4 = scmp.ne.s32.totalorder %s2428_s0, %s2429_s19  ;;  %p2435_p8 = scmp.lt.s32.totalorder %s2433_s21, %s2429_s19 }
 0xa1c   : > { %p2431_p5 = pnand %p2430_p4, %p2623_p3  ;;  %p2436_p10 = por %p2435_p8, %p2434_p7 }
 0xa1e   : > { %p2432_p6 = pneg %p2431_p5 }
 0xa20   : > { %p2437_p11 = pnand %p2436_p10, %p2432_p6 }
 0xa22   : > { %2440 = shalt.err (!%p2437_p11)
}
 0xa23   : > { %s2514_s10 = smov 128   ;;  %s2515_s4 = smov 8  }
 0xa24   : > { %2247 = dma.vmem_to_hbm [thread:$0]  (%p2623_p3), %s1951_s25, 256, %s1953_s30, %s1938_s22, %s2514_s10, %s2514_s10, %s2515_s4  }
 0xa25 PF: > { %s3081_s18 = sld [smem:[#allocation14_spill]] }
 0xa26   : > { %s3082_s5 = sld [smem:[#allocation9_spill]] }
 0xa2b   : > { %p2253_p12 = scmp.ge.s32.totalorder %s3081_s18, 2 }
 0xa2c   : > { %s1967_s23 = sand.u32 1, %s3082_s5  }
 0xa2d   : > { %p2250_p13 = pnand %p2253_p12, %p2633_p9  ;;  %s1968_s26 = scalar_lea.sflag [#allocation6], %s1967_s23 }
 0xa2f   : > { %p2251_p0 = pneg %p2250_p13 }
 0xa31   : > { %2476 = dma.done.wait (%p2251_p0), %s1968_s26, 256  }
 0xa32   : > { %2478 = vsyncadd (%p2251_p0), %s1968_s26, 4294967040  ;;  %s31_s23 = sadd.s32 1, %s3081_s18   ;;  %s3084_s17 = sld [smem:[#allocation10_spill]] }
 0xa33   : > { %p28_p1 = scmp.ge.s32.totalorder %s31_s23, 10   ;;  %s3085_s18 = sld [smem:[#allocation11_spill]] }
 0xa34   : > { %s3086_s19 = sld [smem:[#allocation19_spill]] }
 0xa35   : > { %s3087_s20 = sld [smem:[#allocation12_spill]]  ;;  %30 = sbr.rel (!%p28_p1) target bundleno = 14 (0xe), region = 117 }
 0xa36   : > { %s3088_s21 = sld [smem:[#allocation13_spill]] }
 0xa37   : > { %s3089_s22 = sld [smem:[#allocation15_spill]] }
 0xa38   : > { %s3090_s0 = sld [smem:[#allocation17_spill]] }
 0xa3a   :  { %1974 = vsyncpa [#allocation6], 1 }
 0xa3b   :  { %1976 = vsyncpa [#allocation6 + $0x1], 1 }

</bundles_post_ra>
